<compile_context>
chip_gen: v5e
topology: v5e:2x2
jax: 0.10.0
libtpu: 0.0.40
codegen_flags: <defaults>
</compile_context>

<pallas_src>
import jax
import jax.numpy as jnp
from jax.experimental import pallas as pl
from jax.experimental.pallas import tpu as pltpu

HIDDEN = 126
HIDDEN_PAD = 128      # lane-aligned hidden width
OUT_DIM = 2
TILE_N_MAX = 512      # batch rows per grid step (lives on the lane axis)


def _round_up(x, m):
    return (x + m - 1) // m * m


def _fhn_mlp_kernel(t_ref, w1_ref, b1_ref, wh_ref, bh_ref, w5_ref, b5_ref, out_ref):
    """Feature-major MLP: activations are (HIDDEN_PAD, TILE_N)."""
    t = t_ref[...]                                            # (1, TILE_N) f32

    # Layer 1: rank-1 outer product on the VPU (avoids a K=1 MXU round-trip).
    h = jnp.tanh(w1_ref[...] * t + b1_ref[...])               # (128, TILE_N) f32

    # Layers 2-4: (128,128) @ (128,TILE_N) on the MXU with f32 accumulation.
    mm_dtype = wh_ref.dtype
    for l in range(3):                                        # static unroll, 3 layers
        acc = jnp.dot(wh_ref[l], h.astype(mm_dtype),
                      preferred_element_type=jnp.float32)
        h = jnp.tanh(acc + bh_ref[l])                         # bias + tanh in f32

    # Output layer: (2,128) @ (128,TILE_N) -> lane-dense (2, TILE_N) store.
    out_ref[...] = (jnp.dot(w5_ref[...], h.astype(w5_ref.dtype),
                            preferred_element_type=jnp.float32)
                    + b5_ref[...])


def _prepare_kernel_params(params, matmul_dtype):
    """Pad 126 -> 128, transpose to feature-major, stack the hidden layers."""
    f32 = jnp.float32
    pad_h = HIDDEN_PAD - HIDDEN

    w1k = jnp.pad(params["w1"].astype(f32), ((0, 0), (0, pad_h))).T      # (128, 1)
    b1k = jnp.pad(params["b1"].astype(f32), ((0, 0), (0, pad_h))).T      # (128, 1)

    wh, bh = [], []
    for i in (2, 3, 4):
        w = jnp.pad(params[f"w{i}"].astype(f32), ((0, pad_h), (0, pad_h)))  # (128,128)
        b = jnp.pad(params[f"b{i}"].astype(f32), ((0, 0), (0, pad_h)))      # (1,128)
        wh.append(w.T)                                                      # (128,128)
        bh.append(b.T)                                                      # (128,1)
    whk = jnp.stack(wh).astype(matmul_dtype)                  # (3, 128, 128)
    bhk = jnp.stack(bh)                                       # (3, 128, 1) f32

    w5k = jnp.pad(params["w5"].astype(f32), ((0, pad_h), (0, 0))).T.astype(matmul_dtype)  # (2,128)
    b5k = params["b5"].astype(f32).T                          # (2, 1)
    return w1k, b1k, whk, bhk, w5k, b5k


def fitzhugh_nagumo_forward(t, params, *, matmul_dtype=jnp.float32):
    """t: (N, 1) float32.  Returns (N, 2) float32."""
    N = t.shape[0]
    assert t.shape == (N, 1)

    # Big lane-dense tiles; >= 2 grid steps once N >= 2*TILE_N_MAX so the parallel
    # grid axis can still be sharded across v7x's two TensorCores.
    tile = min(TILE_N_MAX, _round_up(N, 128))
    n_pad = _round_up(N, tile)
    grid = (n_pad // tile,)

    t_row = jnp.pad(t.astype(jnp.float32).reshape(1, N), ((0, 0), (0, n_pad - N)))

    w1k, b1k, whk, bhk, w5k, b5k = _prepare_kernel_params(params, matmul_dtype)

    def resident(shape):
        # Full array resident in VMEM; same block for every grid step -> no re-DMA.
        return pl.BlockSpec(shape, lambda i, _n=len(shape): (0,) * _n)

    out_t = pl.pallas_call(
        _fhn_mlp_kernel,
        out_shape=jax.ShapeDtypeStruct((OUT_DIM, n_pad), jnp.float32),
        grid=grid,
        in_specs=[
            pl.BlockSpec((1, tile), lambda i: (0, i)),             # t tile (lane-dense)
            resident(w1k.shape), resident(b1k.shape),
            resident(whk.shape), resident(bhk.shape),
            resident(w5k.shape), resident(b5k.shape),
        ],
        out_specs=pl.BlockSpec((OUT_DIM, tile), lambda i: (0, i)),  # lane-dense store
        compiler_params=pltpu.CompilerParams(
            dimension_semantics=("parallel",),
        ),
    )(t_row, w1k, b1k, whk, bhk, w5k, b5k)

    return out_t[:, :N].T                                      # (N, 2)


def init_params(key):
    """nn.Linear default init (uniform +/- 1/sqrt(fan_in)).
    Weights stored as (in_features, out_features); biases as (1, out_features)."""
    dims = [(1, HIDDEN), (HIDDEN, HIDDEN), (HIDDEN, HIDDEN), (HIDDEN, HIDDEN), (HIDDEN, OUT_DIM)]
    params = {}
    for idx, (fan_in, fan_out) in enumerate(dims, start=1):
        key, kw, kb = jax.random.split(key, 3)
        bound = 1.0 / jnp.sqrt(jnp.float32(fan_in))
        params[f"w{idx}"] = jax.random.uniform(
            kw, (fan_in, fan_out), jnp.float32, minval=-bound, maxval=bound)
        params[f"b{idx}"] = jax.random.uniform(
            kb, (1, fan_out), jnp.float32, minval=-bound, maxval=bound)
    return params


def reference_forward(t, params):
    h = jnp.tanh(t @ params["w1"] + params["b1"])
    h = jnp.tanh(h @ params["w2"] + params["b2"])
    h = jnp.tanh(h @ params["w3"] + params["b3"])
    h = jnp.tanh(h @ params["w4"] + params["b4"])
    return h @ params["w5"] + params["b5"]


if __name__ == "__main__":
    key = jax.random.PRNGKey(0)
    key, k_t = jax.random.split(key)

    N = 600  # not a tile multiple -> exercises padding and a 2-step parallel grid
    t = jax.random.uniform(k_t, (N, 1), jnp.float32, minval=0.0, maxval=10.0)
    params = init_params(key)

    ref = reference_forward(t, params)

    # f32-operand MXU path: matches the JAX reference tightly.
    out_f32 = jax.block_until_ready(
        fitzhugh_nagumo_forward(t, params, matmul_dtype=jnp.float32))
    assert out_f32.shape == (N, 2)
    assert jnp.allclose(out_f32, ref, atol=1e-4, rtol=1e-4), "f32 path mismatch"

    # bf16-operand MXU path (f32 accumulation): fast path for v5e/v6e/v7x MXUs.
    out_bf16 = jax.block_until_ready(
        fitzhugh_nagumo_forward(t, params, matmul_dtype=jnp.bfloat16))
    assert out_bf16.shape == (N, 2)
    rel_err = jnp.linalg.norm(out_bf16 - ref) / jnp.linalg.norm(ref)
    assert rel_err < 2e-2, f"bf16 path relative error too large: {rel_err}"

    print("KERNEL_OK")
</pallas_src>

<mosaic_0001>
module attributes {stable_mosaic.version = 11 : i64} {
  func.func @_fhn_mlp_kernel(%arg0: i32, %arg1: memref<1x512xf32, #tpu.memory_space<vmem>>, %arg2: memref<128x1xf32, #tpu.memory_space<vmem>>, %arg3: memref<128x1xf32, #tpu.memory_space<vmem>>, %arg4: memref<3x128x128xf32, #tpu.memory_space<vmem>>, %arg5: memref<3x128x1xf32, #tpu.memory_space<vmem>>, %arg6: memref<2x128xf32, #tpu.memory_space<vmem>>, %arg7: memref<2x1xf32, #tpu.memory_space<vmem>>, %arg8: memref<2x512xf32, #tpu.memory_space<vmem>>) attributes {dimension_semantics = [#tpu.dimension_semantics<parallel>], iteration_bounds = array<i64: 2>, scalar_prefetch = 0 : i64, scratch_operands = 0 : i64, tpu.core_type = #tpu.core_type<tc>, window_params = [{transform_indices = @transform_0, window_bounds = array<i64: 1, 512>}, {pipeline_mode = #tpu.pipeline_mode<synchronous>, transform_indices = @transform_1, window_bounds = array<i64: 128, 1>}, {pipeline_mode = #tpu.pipeline_mode<synchronous>, transform_indices = @transform_2, window_bounds = array<i64: 128, 1>}, {pipeline_mode = #tpu.pipeline_mode<synchronous>, transform_indices = @transform_3, window_bounds = array<i64: 3, 128, 128>}, {pipeline_mode = #tpu.pipeline_mode<synchronous>, transform_indices = @transform_4, window_bounds = array<i64: 3, 128, 1>}, {pipeline_mode = #tpu.pipeline_mode<synchronous>, transform_indices = @transform_5, window_bounds = array<i64: 2, 128>}, {pipeline_mode = #tpu.pipeline_mode<synchronous>, transform_indices = @transform_6, window_bounds = array<i64: 2, 1>}, {transform_indices = @transform_7, window_bounds = array<i64: 2, 512>}]} {
    %c0 = arith.constant 0 : index
    %c0_0 = arith.constant 0 : index
    %0 = vector.load %arg1[%c0, %c0_0] : memref<1x512xf32, #tpu.memory_space<vmem>>, vector<1x512xf32>
    %c0_1 = arith.constant 0 : index
    %c0_2 = arith.constant 0 : index
    %1 = vector.load %arg2[%c0_1, %c0_2] : memref<128x1xf32, #tpu.memory_space<vmem>>, vector<128x1xf32>
    %2 = vector.broadcast %1 : vector<128x1xf32> to vector<128x512xf32>
    %3 = vector.broadcast %0 : vector<1x512xf32> to vector<128x512xf32>
    %4 = arith.mulf %2, %3 : vector<128x512xf32>
    %c0_3 = arith.constant 0 : index
    %c0_4 = arith.constant 0 : index
    %5 = vector.load %arg3[%c0_3, %c0_4] : memref<128x1xf32, #tpu.memory_space<vmem>>, vector<128x1xf32>
    %6 = vector.broadcast %5 : vector<128x1xf32> to vector<128x512xf32>
    %7 = arith.addf %4, %6 : vector<128x512xf32>
    %8 = math.tanh %7 : vector<128x512xf32>
    %c0_5 = arith.constant 0 : index
    %c0_6 = arith.constant 0 : index
    %c0_7 = arith.constant 0 : index
    %9 = vector.load %arg4[%c0_5, %c0_6, %c0_7] : memref<3x128x128xf32, #tpu.memory_space<vmem>>, vector<1x128x128xf32>
    %10 = vector.shape_cast %9 : vector<1x128x128xf32> to vector<128x128xf32>
    %cst = arith.constant dense<0.000000e+00> : vector<128x512xf32>
    %11 = tpu.matmul %10, %8, %cst {dimension_numbers = #tpu.dot_dimension_numbers<[1], [0], [0], [1], [0, 0, 1, 1], [], []>} : vector<128x128xf32>, vector<128x512xf32>, vector<128x512xf32> -> vector<128x512xf32>
    %c0_8 = arith.constant 0 : index
    %c0_9 = arith.constant 0 : index
    %c0_10 = arith.constant 0 : index
    %12 = vector.load %arg5[%c0_8, %c0_9, %c0_10] : memref<3x128x1xf32, #tpu.memory_space<vmem>>, vector<1x128x1xf32>
    %13 = vector.shape_cast %12 : vector<1x128x1xf32> to vector<128x1xf32>
    %14 = vector.broadcast %13 : vector<128x1xf32> to vector<128x512xf32>
    %15 = arith.addf %11, %14 : vector<128x512xf32>
    %16 = math.tanh %15 : vector<128x512xf32>
    %c1 = arith.constant 1 : index
    %c0_11 = arith.constant 0 : index
    %c0_12 = arith.constant 0 : index
    %17 = vector.load %arg4[%c1, %c0_11, %c0_12] : memref<3x128x128xf32, #tpu.memory_space<vmem>>, vector<1x128x128xf32>
    %18 = vector.shape_cast %17 : vector<1x128x128xf32> to vector<128x128xf32>
    %cst_13 = arith.constant dense<0.000000e+00> : vector<128x512xf32>
    %19 = tpu.matmul %18, %16, %cst_13 {dimension_numbers = #tpu.dot_dimension_numbers<[1], [0], [0], [1], [0, 0, 1, 1], [], []>} : vector<128x128xf32>, vector<128x512xf32>, vector<128x512xf32> -> vector<128x512xf32>
    %c1_14 = arith.constant 1 : index
    %c0_15 = arith.constant 0 : index
    %c0_16 = arith.constant 0 : index
    %20 = vector.load %arg5[%c1_14, %c0_15, %c0_16] : memref<3x128x1xf32, #tpu.memory_space<vmem>>, vector<1x128x1xf32>
    %21 = vector.shape_cast %20 : vector<1x128x1xf32> to vector<128x1xf32>
    %22 = vector.broadcast %21 : vector<128x1xf32> to vector<128x512xf32>
    %23 = arith.addf %19, %22 : vector<128x512xf32>
    %24 = math.tanh %23 : vector<128x512xf32>
    %c2 = arith.constant 2 : index
    %c0_17 = arith.constant 0 : index
    %c0_18 = arith.constant 0 : index
    %25 = vector.load %arg4[%c2, %c0_17, %c0_18] : memref<3x128x128xf32, #tpu.memory_space<vmem>>, vector<1x128x128xf32>
    %26 = vector.shape_cast %25 : vector<1x128x128xf32> to vector<128x128xf32>
    %cst_19 = arith.constant dense<0.000000e+00> : vector<128x512xf32>
    %27 = tpu.matmul %26, %24, %cst_19 {dimension_numbers = #tpu.dot_dimension_numbers<[1], [0], [0], [1], [0, 0, 1, 1], [], []>} : vector<128x128xf32>, vector<128x512xf32>, vector<128x512xf32> -> vector<128x512xf32>
    %c2_20 = arith.constant 2 : index
    %c0_21 = arith.constant 0 : index
    %c0_22 = arith.constant 0 : index
    %28 = vector.load %arg5[%c2_20, %c0_21, %c0_22] : memref<3x128x1xf32, #tpu.memory_space<vmem>>, vector<1x128x1xf32>
    %29 = vector.shape_cast %28 : vector<1x128x1xf32> to vector<128x1xf32>
    %30 = vector.broadcast %29 : vector<128x1xf32> to vector<128x512xf32>
    %31 = arith.addf %27, %30 : vector<128x512xf32>
    %32 = math.tanh %31 : vector<128x512xf32>
    %c0_23 = arith.constant 0 : index
    %c0_24 = arith.constant 0 : index
    %33 = vector.load %arg6[%c0_23, %c0_24] : memref<2x128xf32, #tpu.memory_space<vmem>>, vector<2x128xf32>
    %cst_25 = arith.constant dense<0.000000e+00> : vector<2x512xf32>
    %34 = tpu.matmul %33, %32, %cst_25 {dimension_numbers = #tpu.dot_dimension_numbers<[1], [0], [0], [1], [0, 0, 1, 1], [], []>} : vector<2x128xf32>, vector<128x512xf32>, vector<2x512xf32> -> vector<2x512xf32>
    %c0_26 = arith.constant 0 : index
    %c0_27 = arith.constant 0 : index
    %35 = vector.load %arg7[%c0_26, %c0_27] : memref<2x1xf32, #tpu.memory_space<vmem>>, vector<2x1xf32>
    %36 = vector.broadcast %35 : vector<2x1xf32> to vector<2x512xf32>
    %37 = arith.addf %34, %36 : vector<2x512xf32>
    %c0_28 = arith.constant 0 : index
    %c0_29 = arith.constant 0 : index
    %38 = vector.load %arg8[%c0_28, %c0_29] : memref<2x512xf32, #tpu.memory_space<vmem>>, vector<2x512xf32>
    tpu.vector_store %arg8[%c0_28, %c0_29], %37 {strides = array<i32>} : memref<2x512xf32, #tpu.memory_space<vmem>>, vector<2x512xf32>,
    return
  }
  func.func @transform_0(%arg0: i32) -> (i32, i32) {
    %c0_i32 = arith.constant 0 : i32
    %c0_i32_0 = arith.constant 0 : i32
    return %c0_i32, %arg0 : i32, i32
  }
  func.func @transform_1(%arg0: i32) -> (i32, i32) {
    %c0_i32 = arith.constant 0 : i32
    %c0_i32_0 = arith.constant 0 : i32
    %c0_i32_1 = arith.constant 0 : i32
    return %c0_i32, %c0_i32_0 : i32, i32
  }
  func.func @transform_2(%arg0: i32) -> (i32, i32) {
    %c0_i32 = arith.constant 0 : i32
    %c0_i32_0 = arith.constant 0 : i32
    %c0_i32_1 = arith.constant 0 : i32
    return %c0_i32, %c0_i32_0 : i32, i32
  }
  func.func @transform_3(%arg0: i32) -> (i32, i32, i32) {
    %c0_i32 = arith.constant 0 : i32
    %c0_i32_0 = arith.constant 0 : i32
    %c0_i32_1 = arith.constant 0 : i32
    %c0_i32_2 = arith.constant 0 : i32
    return %c0_i32, %c0_i32_0, %c0_i32_1 : i32, i32, i32
  }
  func.func @transform_4(%arg0: i32) -> (i32, i32, i32) {
    %c0_i32 = arith.constant 0 : i32
    %c0_i32_0 = arith.constant 0 : i32
    %c0_i32_1 = arith.constant 0 : i32
    %c0_i32_2 = arith.constant 0 : i32
    return %c0_i32, %c0_i32_0, %c0_i32_1 : i32, i32, i32
  }
  func.func @transform_5(%arg0: i32) -> (i32, i32) {
    %c0_i32 = arith.constant 0 : i32
    %c0_i32_0 = arith.constant 0 : i32
    %c0_i32_1 = arith.constant 0 : i32
    return %c0_i32, %c0_i32_0 : i32, i32
  }
  func.func @transform_6(%arg0: i32) -> (i32, i32) {
    %c0_i32 = arith.constant 0 : i32
    %c0_i32_0 = arith.constant 0 : i32
    %c0_i32_1 = arith.constant 0 : i32
    return %c0_i32, %c0_i32_0 : i32, i32
  }
  func.func @transform_7(%arg0: i32) -> (i32, i32) {
    %c0_i32 = arith.constant 0 : i32
    %c0_i32_0 = arith.constant 0 : i32
    return %c0_i32, %arg0 : i32, i32
  }
}

</mosaic_0001>

<bundles_post_ra>
// kernel: tpu_custom_call.1
= control target key start
LH: loop header
LB: loop body
LE: loop exit
PB: predicated region body
PF: predicated region fallthrough
CT: control target
= control target key end

     0   :  { %12 = vsyncpa [#allocation3], 0  ;;  %s4433_s0 = inlined_call_operand.vmem [shape: f32[1,1024], index: 0, kind: input, shape index: {}]   ;;  %s4434_s1 = inlined_call_operand.vmem [shape: f32[128,1], index: 1, kind: input, shape index: {}]   ;;  %s4435_s2 = inlined_call_operand.vmem [shape: f32[128,1], index: 2, kind: input, shape index: {}]   ;;  %s4436_s3 = inlined_call_operand.vmem [shape: f32[3,128,128], index: 3, kind: input, shape index: {}]   ;;  %s4437_s4 = inlined_call_operand.vmem [shape: f32[3,128,1], index: 4, kind: input, shape index: {}]   ;;  %s4438_s5 = inlined_call_operand.vmem [shape: f32[2,128], index: 5, kind: input, shape index: {}]   ;;  %s4439_s6 = inlined_call_operand.vmem [shape: f32[2,1], index: 6, kind: input, shape index: {}]   ;;  %s4440_s7 = inlined_call_operand.hbm [shape: f32[2,1024], index: 7, kind: output, shape index: {}]  }
   0x1   :  { %14 = vsyncpa [#allocation3 + $0x1], 0  ;;  %s2894_s24 = smov 0   ;;  %s2896_s25 = smov 0  }
   0x2   :  { %s2898_s26 = smov 0   ;;  %s2900_s27 = smov 0  }
   0x3 LB: > { %s2915_s28 = sadd.s32 4294967295, %s2851_s27   ;;  %s2158_s29 = sadd.s32 4294967294, %s2851_s27   ;;  %s2851_s27 = sphi %s2900_s27, %s4574_s27   ;;  %s2847_s26 = sphi %s2898_s26, %s4573_s26   ;;  %s2843_s25 = sphi %s2896_s25, %s4572_s25   ;;  %s2839_s24 = sphi %s2894_s24, %s4571_s24  }
   0x4   : > { %s2919_s30 = sadd.s32 1, %s2851_s27   ;;  %s179_s8 = sadd.s32 1, %s2847_s26 }
   0x5   : > { %s176_s9 = ssub.s32 %s2851_s27, %s2919_s30  ;;  %p189_p0 = scmp.ne.s32.totalorder %s2847_s26, %s2843_s25 }
   0x6   : > { %p177_p1 = scmp.eq.s32.totalorder %s176_s9, 0  ;;  %p190_p2 = scmp.eq.s32.totalorder %s2915_s28, 1 }
   0x7   : > { %p195_p3 = scmp.ne.s32.totalorder %s2843_s25, %s2839_s24  ;;  %p196_p4 = scmp.eq.s32.totalorder %s2158_s29, 1 }
   0x8   : > { %s2930_s10 = scalar_select %p177_p1, %s2847_s26, %s179_s8  }
   0x9   : > { %p2932_p5 = por %p190_p2, %p189_p0  ;;  %p2936_p6 = por %p196_p4, %p195_p3 }
   0xa   : > { %p2161_p7 = scmp.ge.s32.totalorder %s2851_s27, 1  ;;  %p240_p8 = scmp.lt.s32.totalorder %s2851_s27, 3 }
   0xc   : > { %p241_p9 = pnand %p2161_p7, %p240_p8 }
   0xe   : > { %244 = sbr.rel (%p241_p9) target bundleno = 1254 (0x4e6), region = 48 }
  0x13   : > { %v461_v0 = vld [vmem:[%s4435_s2 + $0x70] sm:$0xff]  ;;  %v462_v1 = vld [vmem:[%s4435_s2 + $0x78] sm:$0xff]  ;;  %v2853_v3 = vmov 0   ;;  %v290_v4 = vld [vmem:[%s4434_s1 + $0x60] sm:$0xff]  ;;  %s2163_s21 = sshll.u32 %s2915_s28, 2  ;;  %s268_s8 = sand.u32 1, %s2843_s25  }
  0x14   : > { %v293_v2 = vld [vmem:[%s4434_s1 + $0x78] sm:$0xff]  ;;  %2276 = vset.pattern.permute.xlu2 %v2853_v3  ;;  %2275 = vset.pattern.permute.xlu1 %v2853_v3  ;;  %v292_v5 = vld [vmem:[%s4434_s1 + $0x70] sm:$0xff]  ;;  %v291_v6 = vld [vmem:[%s4434_s1 + $0x68] sm:$0xff]  ;;  %p272_p10 = scmp.lt.s32.totalorder %s2163_s21, 7  ;;  %s2162_s9 = sshll.u32 %s268_s8, 3  ;;  %vm2077_vm0 = vcmask 1041408  }
  0x15   : > { %2274 = vset.pattern.permute.xlu0 %v2853_v3  ;;  %535 = vperm.xlu2 %2276, %v461_v0   ;;  %v459_v7 = vld [vmem:[%s4435_s2 + $0x60] sm:$0xff]  ;;  %v460_v8 = vld [vmem:[%s4435_s2 + $0x68] sm:$0xff]  ;;  %v289_v9 = vld [vmem:[%s4434_s1 + $0x58] sm:$0xff]  ;;  %s2233_s13 = sshll.u32 %s2915_s28, 3  ;;  %vm2079_vm1 = vcmask 1045508   ;;  %s270_s17 = scalar_lea.vmem [#allocation2], %s2162_s9 }
  0x16   : > { %540 = vperm.xlu1 %2275, %v462_v1   ;;  %371 = vperm.xlu0 %2274, %v293_v2   ;;  %v287_v10 = vld [vmem:[%s4434_s1 + $0x48] sm:$0xff]  ;;  %v458_v11 = vld [vmem:[%s4435_s2 + $0x58] sm:$0xff]  ;;  %v288_v12 = vld [vmem:[%s4434_s1 + $0x50] sm:$0xff]  ;;  %s4576_s21 = smov (!%p272_p10, %s2163_s21), 7  ;;  %s2099_s18 = sshll.u32 %s270_s17, 4  ;;  %vm2081_vm2 = vcmask 1043456   ;;  %s2100_s18 = int_to_ptr.vmem [resolvable:$true] %s2099_s18 }
  0x17   : > { %v456_v13 = vld [vmem:[%s4435_s2 + $0x48] sm:$0xff]  ;;  %v457_v14 = vld [vmem:[%s4435_s2 + $0x50] sm:$0xff]  ;;  %v286_v15 = vld [vmem:[%s4434_s1 + $0x40] sm:$0xff]  ;;  %s274_s16 = scalar_lea.vmem %s4433_s0, %s4576_s21  ;;  %s2086_s28 = scalar_lea.sflag [#allocation3], %s268_s8 }
  0x18   : > { %v284_v16 = vld [vmem:[%s4434_s1 + $0x30] sm:$0xff]  ;;  %v455_v17 = vld [vmem:[%s4435_s2 + $0x40] sm:$0xff]  ;;  %v285_v18 = vld [vmem:[%s4434_s1 + $0x38] sm:$0xff]  ;;  %s2809_s29 = scalar_lea.hbm %s4440_s7, 16 }
  0x19   : > { %v453_v19 = vld [vmem:[%s4435_s2 + $0x30] sm:$0xff]  ;;  %v454_v20 = vld [vmem:[%s4435_s2 + $0x38] sm:$0xff]  ;;  %v283_v21 = vld [vmem:[%s4434_s1 + $0x28] sm:$0xff] }
  0x1a   : > { %v281_v22 = vld [vmem:[%s4434_s1 + $0x18] sm:$0xff]  ;;  %v452_v23 = vld [vmem:[%s4435_s2 + $0x28] sm:$0xff]  ;;  %v282_v24 = vld [vmem:[%s4434_s1 + $0x20] sm:$0xff] }
  0x1b   : > { %v450_v25 = vld [vmem:[%s4435_s2 + $0x18] sm:$0xff]  ;;  %v451_v26 = vld [vmem:[%s4435_s2 + $0x20] sm:$0xff]  ;;  %v280_v27 = vld [vmem:[%s4434_s1 + $0x10] sm:$0xff] }
  0x1c   : > { %v278_v28 = vld [vmem:[%s4434_s1] sm:$0xff]  ;;  %v449_v29 = vld [vmem:[%s4435_s2 + $0x10] sm:$0xff]  ;;  %v279_v30 = vld [vmem:[%s4434_s1 + $0x8] sm:$0xff] }
  0x1d   : > { %356 = vperm.xlu2 %2276, %v290_v4   ;;  %v702_v31 = vld [vmem:[%s4437_s4 + $0x78] sm:$0xff]  ;;  %v447_v32 = vld [vmem:[%s4435_s2] sm:$0xff]  ;;  %v448_v33 = vld [vmem:[%s4435_s2 + $0x8] sm:$0xff] }
  0x1e   : > { %366 = vperm.xlu0 %2274, %v292_v5   ;;  %361 = vperm.xlu1 %2275, %v291_v6   ;;  %v699_v34 = vld [vmem:[%s4437_s4 + $0x60] sm:$0xff]  ;;  %v700_v35 = vld [vmem:[%s4437_s4 + $0x68] sm:$0xff]  ;;  %v701_v36 = vld [vmem:[%s4437_s4 + $0x70] sm:$0xff] }
  0x1f   : > { %v696_v38 = vld [vmem:[%s4437_s4 + $0x48] sm:$0xff]  ;;  %v697_v39 = vld [vmem:[%s4437_s4 + $0x50] sm:$0xff]  ;;  %v698_v40 = vld [vmem:[%s4437_s4 + $0x58] sm:$0xff] }
  0x20   : > { %v693_v41 = vld [vmem:[%s4437_s4 + $0x30] sm:$0xff]  ;;  %v694_v43 = vld [vmem:[%s4437_s4 + $0x38] sm:$0xff]  ;;  %v695_v44 = vld [vmem:[%s4437_s4 + $0x40] sm:$0xff] }
  0x21   : > { %v277_v45 = vld [vmem:[%s274_s16] sm:$0xf]  ;;  %v690_v46 = vld [vmem:[%s4437_s4 + $0x18] sm:$0xff]  ;;  %v692_v48 = vld [vmem:[%s4437_s4 + $0x28] sm:$0xff]  ;;  %s2097_s16 = scalar_lea.hbm %s4440_s7, %s2233_s13 }
  0x22   : > { %v691_v47 = vld [vmem:[%s4437_s4 + $0x20] sm:$0xff]  ;;  %v3083_v49 = vperm.slane %v277_v45, 0  ;;  %v3085_v50 = vperm.slane %v277_v45, 1  ;;  %v3087_v51 = vperm.slane %v277_v45, 2  ;;  %v3095_v59 = vperm.slane %v277_v45, 3  ;;  %v688_v60 = vld [vmem:[%s4437_s4 + $0x8] sm:$0xff] }
  0x23   : > { %v687_v58 = vld [vmem:[%s4437_s4] sm:$0xff]  ;;  %v689_v61 = vld [vmem:[%s4437_s4 + $0x10] sm:$0xff]  ;;  %s2101_s19 = sshll.u32 %s2097_s16, 4  ;;  %s2102_s19 = int_to_ptr.hbm [resolvable:$true] %s2101_s19 }
  0x24   : > { %s2803_s20 = sshra.s32 %s2102_s19, 4  ;;  %s2804_s20 = int_to_ptr.hbm [resolvable:$true] %s2803_s20 }
  0x25   : > { %525 = vperm.xlu2 %2276, %v459_v7   ;;  %s2805_s22 = scalar_lea.hbm %s2804_s20, 8  ;;  %p2810_p0 = scmp.lt.s32.totalorder %s2804_s20, %s4440_s7 }
  0x26   : > { %530 = vperm.xlu0 %2274, %v460_v8   ;;  %351 = vperm.xlu1 %2275, %v289_v9   ;;  %p2806_p11 = scmp.ne.s32.totalorder %s2804_s20, %s2805_s22  ;;  %p2811_p1 = scmp.lt.s32.totalorder %s2809_s29, %s2805_s22 }
  0x28   : > { %p2807_p12 = pnand %p2806_p11, %p2932_p5  ;;  %p2812_p2 = por %p2811_p1, %p2810_p0 }
  0x2a   : > { %p2808_p13 = pneg %p2807_p12 }
  0x2c   : > { %p2813_p3 = pnand %p2812_p2, %p2808_p13 }
  0x2d   : > { %341 = vperm.xlu2 %2276, %v287_v10  }
  0x2e   : > { %520 = vperm.xlu1 %2275, %v458_v11   ;;  %346 = vperm.xlu0 %2274, %v288_v12   ;;  %v2193_v11 = vld [vmem:[%s4437_s4 + $0xe8] sm:$0xff] }
  0x35   : > { %510 = vperm.xlu2 %2276, %v456_v13  }
  0x36   : > { %515 = vperm.xlu0 %2274, %v457_v14   ;;  %336 = vperm.xlu1 %2275, %v286_v15   ;;  %v2194_v14 = vld [vmem:[%s4437_s4 + $0xf0] sm:$0xff] }
  0x3d   : > { %326 = vperm.xlu2 %2276, %v284_v16  }
  0x3e   : > { %505 = vperm.xlu1 %2275, %v455_v17   ;;  %331 = vperm.xlu0 %2274, %v285_v18   ;;  %v2195_v17 = vld [vmem:[%s4437_s4 + $0xf8] sm:$0xff] }
  0x45   : > { %495 = vperm.xlu2 %2276, %v453_v19  }
  0x46   : > { %500 = vperm.xlu0 %2274, %v454_v20   ;;  %321 = vperm.xlu1 %2275, %v283_v21  }
  0x4d   : > { %311 = vperm.xlu2 %2276, %v281_v22  }
  0x4e   : > { %490 = vperm.xlu1 %2275, %v452_v23   ;;  %316 = vperm.xlu0 %2274, %v282_v24  }
  0x55   : > { %480 = vperm.xlu2 %2276, %v450_v25  }
  0x56   : > { %485 = vperm.xlu0 %2274, %v451_v26   ;;  %306 = vperm.xlu1 %2275, %v280_v27  }
  0x5d   : > { %296 = vperm.xlu2 %2276, %v278_v28  }
  0x5e   : > { %475 = vperm.xlu1 %2275, %v449_v29   ;;  %301 = vperm.xlu0 %2274, %v279_v30  }
  0x65   : > { %780 = vperm.xlu2 %2276, %v702_v31  }
  0x66   : > { %465 = vperm.xlu1 %2275, %v447_v32   ;;  %470 = vperm.xlu0 %2274, %v448_v33  }
  0x6d   : > { %765 = vperm.xlu2 %2276, %v699_v34  }
  0x6e   : > { %770 = vperm.xlu1 %2275, %v700_v35   ;;  %775 = vperm.xlu0 %2274, %v701_v36   ;;  %v2190_v35 = vld [vmem:[%s4437_s4 + $0xd0] sm:$0xff] }
  0x6f   : > { %v3050_v37 = vpop.permute.xlu2 %535 }
  0x75   : > { %750 = vperm.xlu2 %2276, %v696_v38  }
  0x76   : > { %755 = vperm.xlu1 %2275, %v697_v39   ;;  %760 = vperm.xlu0 %2274, %v698_v40   ;;  %v2191_v39 = vld [vmem:[%s4437_s4 + $0xd8] sm:$0xff] }
  0x77   : > { %v357_v42 = vpop.permute.xlu2 %356 }
  0x78   : > { %v431_v1 = vmul.f32 %v3083_v49, %v357_v42  ;;  %v432_v2 = vmul.f32 %v3085_v50, %v357_v42  ;;  %v433_v5 = vmul.f32 %v3087_v51, %v357_v42  ;;  %v434_v9 = vmul.f32 %v3095_v59, %v357_v42  ;;  %v2192_v42 = vld [vmem:[%s4437_s4 + $0xe0] sm:$0xff] }
  0x7d   : > { %735 = vperm.xlu2 %2276, %v693_v41  }
  0x7e   : > { %740 = vperm.xlu1 %2275, %v694_v43   ;;  %745 = vperm.xlu0 %2274, %v695_v44  }
  0x7f   : > { %v526_v52 = vpop.permute.xlu2 %525 }
  0x80   : > { %v591_v8 = vadd.f32 %v526_v52, %v431_v1  ;;  %v592_v10 = vadd.f32 %v526_v52, %v432_v2  ;;  %v593_v16 = vadd.f32 %v526_v52, %v433_v5  ;;  %v594_v19 = vadd.f32 %v526_v52, %v434_v9  ;;  %v2187_v1 = vld [vmem:[%s4437_s4 + $0xb8] sm:$0xff]  ;;  %v2188_v5 = vld [vmem:[%s4437_s4 + $0xc0] sm:$0xff] }
  0x85   : > { %720 = vperm.xlu2 %2276, %v690_v46  }
  0x86   : > { %725 = vperm.xlu1 %2275, %v691_v47   ;;  %730 = vperm.xlu0 %2274, %v692_v48  }
  0x87   : > { %v3105_v3 = vpop.permute.xlu2 %341 }
  0x88   : > { %v541_v53 = vpop.permute.xlu1 %540  ;;  %v372_v54 = vpop.permute.xlu0 %371 }
  0x89   : > { %v443_v55 = vmul.f32 %v3083_v49, %v372_v54  ;;  %v444_v56 = vmul.f32 %v3085_v50, %v372_v54  ;;  %v445_v57 = vmul.f32 %v3087_v51, %v372_v54  ;;  %v446_v4 = vmul.f32 %v3095_v59, %v372_v54 }
  0x8a   : > { %v419_v54 = vmul.f32 %v3083_v49, %v3105_v3 }
  0x8b   : > { %v603_v62 = vadd.f32 %v541_v53, %v443_v55  ;;  %v604_v63 = vadd.f32 %v541_v53, %v444_v56  ;;  %v605_v0 = vadd.f32 %v541_v53, %v445_v57  ;;  %v606_v13 = vadd.f32 %v541_v53, %v446_v4 }
  0x8d   : > { %705 = vperm.xlu2 %2276, %v687_v58   ;;  %2277 = vtanh.f32 %v603_v62 }
  0x8e   : > { %710 = vperm.xlu1 %2275, %v688_v60   ;;  %715 = vperm.xlu0 %2274, %v689_v61   ;;  %2279 = vtanh.f32 %v604_v63  ;;  %v420_v63 = vmul.f32 %v3085_v50, %v3105_v3 }
  0x8f   : > { %2281 = vtanh.f32 %v605_v0  ;;  %v3126_v29 = vpop.permute.xlu2 %510 }
  0x90   : > { %v367_v6 = vpop.permute.xlu0 %366  ;;  %v362_v7 = vpop.permute.xlu1 %361  ;;  %2283 = vtanh.f32 %v591_v8  ;;  %v579_v9 = vadd.f32 %v3126_v29, %v419_v54 }
  0x91   : > { %2285 = vtanh.f32 %v592_v10  ;;  %v439_v20 = vmul.f32 %v3083_v49, %v367_v6  ;;  %v435_v21 = vmul.f32 %v3083_v49, %v362_v7  ;;  %v436_v22 = vmul.f32 %v3085_v50, %v362_v7 }
  0x92   : > { %v437_v23 = vmul.f32 %v3087_v51, %v362_v7  ;;  %2287 = vtanh.f32 %v606_v13  ;;  %v440_v24 = vmul.f32 %v3085_v50, %v367_v6  ;;  %v438_v25 = vmul.f32 %v3095_v59, %v362_v7  ;;  %v2189_v7 = vld [vmem:[%s4437_s4 + $0xc8] sm:$0xff] }
  0x93   : > { %v2278_v12 = vpop.eup %2277  ;;  %2289 = vtanh.f32 %v593_v16  ;;  %v441_v28 = vmul.f32 %v3087_v51, %v367_v6  ;;  %v442_v33 = vmul.f32 %v3095_v59, %v367_v6  ;;  %v599_v38 = vadd.f32 %v3050_v37, %v439_v20 }
  0x94   : > { %v2280_v15 = vpop.eup %2279  ;;  %783 = vmatpush.msra.mxu0 %v2278_v12  ;;  %2291 = vtanh.f32 %v594_v19  ;;  %v600_v41 = vadd.f32 %v3050_v37, %v440_v24  ;;  %v580_v12 = vadd.f32 %v3126_v29, %v420_v63 }
  0x95   : > { %v2282_v18 = vpop.eup %2281  ;;  %848 = vmatpush.msra.mxu1 %v2280_v15  ;;  %1208 = vperm.xlu2 %2276, %v2193_v11   ;;  %v601_v44 = vadd.f32 %v3050_v37, %v441_v28  ;;  %v602_v46 = vadd.f32 %v3050_v37, %v442_v33  ;;  %v421_v11 = vmul.f32 %v3087_v51, %v3105_v3  ;;  %v2186_v33 = vld [vmem:[%s4437_s4 + $0xb0] sm:$0xff] }
  0x96   : > { %913 = vmatpush.msra.mxu2 %v2282_v18  ;;  %1213 = vperm.xlu1 %2275, %v2194_v14   ;;  %v3132_v36 = vpop.eup %2283  ;;  %v422_v18 = vmul.f32 %v3095_v59, %v3105_v3 }
  0x97   : > { %1218 = vperm.xlu0 %2274, %v2195_v17   ;;  %v3138_v40 = vpop.eup %2285  ;;  %v3161_v4 = vpop.permute.xlu2 %326  ;;  %v581_v28 = vadd.f32 %v3126_v29, %v421_v11 }
  0x98   : > { %v531_v26 = vpop.permute.xlu0 %530  ;;  %v352_v27 = vpop.permute.xlu1 %351  ;;  %v407_v54 = vmul.f32 %v3083_v49, %v3161_v4 }
  0x99   : > { %v595_v30 = vadd.f32 %v531_v26, %v435_v21  ;;  %v596_v31 = vadd.f32 %v531_v26, %v436_v22  ;;  %v597_v32 = vadd.f32 %v531_v26, %v437_v23  ;;  %v598_v34 = vadd.f32 %v531_v26, %v438_v25  ;;  %v2288_v43 = vpop.eup %2287 }
  0x9a   : > { %v3145_v45 = vpop.eup %2289  ;;  %978 = vmatpush.msra.mxu3 %v2288_v43  ;;  %v427_v47 = vmul.f32 %v3083_v49, %v352_v27  ;;  %v428_v48 = vmul.f32 %v3085_v50, %v352_v27  ;;  %v429_v52 = vmul.f32 %v3087_v51, %v352_v27  ;;  %v430_v55 = vmul.f32 %v3095_v59, %v352_v27 }
  0x9b   : > { %2293 = vtanh.f32 %v595_v30  ;;  %v3151_v53 = vpop.eup %2291  ;;  %v2185_v30 = vld [vmem:[%s4437_s4 + $0xa8] sm:$0xff] }
  0x9c   : > { %2295 = vtanh.f32 %v596_v31 }
  0x9d   : > { %2297 = vtanh.f32 %v597_v32  ;;  %1193 = vperm.xlu2 %2276, %v2190_v35   ;;  %v582_v32 = vadd.f32 %v3126_v29, %v422_v18  ;;  %v2184_v35 = vld [vmem:[%s4437_s4 + $0xa0] sm:$0xff] }
  0x9e   : > { %2299 = vtanh.f32 %v598_v34  ;;  %1198 = vperm.xlu1 %2275, %v2191_v39  }
  0x9f   : > { %2301 = vtanh.f32 %v599_v38  ;;  %1203 = vperm.xlu0 %2274, %v2192_v42   ;;  %v3190_v34 = vpop.permute.xlu2 %495 }
  0xa0   : > { %2303 = vtanh.f32 %v600_v41  ;;  %v521_v56 = vpop.permute.xlu1 %520  ;;  %v347_v57 = vpop.permute.xlu0 %346 }
  0xa1   : > { %v2294_v37 = vpop.eup %2293  ;;  %2305 = vtanh.f32 %v601_v44  ;;  %v587_v58 = vadd.f32 %v521_v56, %v427_v47  ;;  %v588_v60 = vadd.f32 %v521_v56, %v428_v48  ;;  %v589_v61 = vadd.f32 %v521_v56, %v429_v52 }
  0xa2   : > { %v2296_v62 = vpop.eup %2295  ;;  %2307 = vtanh.f32 %v602_v46  ;;  %v590_v0 = vadd.f32 %v521_v56, %v430_v55  ;;  %v423_v14 = vmul.f32 %v3083_v49, %v347_v57  ;;  %v424_v15 = vmul.f32 %v3085_v50, %v347_v57  ;;  %v2182_v55 = vld [vmem:[%s4437_s4 + $0x90] sm:$0xff] }
  0xa3   : > { %v2298_v2 = vpop.eup %2297  ;;  %2309 = vtanh.f32 %v587_v58  ;;  %v425_v16 = vmul.f32 %v3087_v51, %v347_v57  ;;  %v426_v19 = vmul.f32 %v3095_v59, %v347_v57  ;;  %v408_v57 = vmul.f32 %v3085_v50, %v3161_v4 }
  0xa4   : > { %v2300_v6 = vpop.eup %2299  ;;  %2311 = vtanh.f32 %v588_v60  ;;  %v567_v60 = vadd.f32 %v3190_v34, %v407_v54 }
  0xa5   : > { %v2302_v8 = vpop.eup %2301  ;;  %2313 = vtanh.f32 %v589_v61  ;;  %1178 = vperm.xlu2 %2276, %v2187_v1   ;;  %v2181_v61 = vld [vmem:[%s4437_s4 + $0x88] sm:$0xff]  ;;  %v568_v63 = vadd.f32 %v3190_v34, %v408_v57 }
  0xa6   : > { %v2304_v10 = vpop.eup %2303  ;;  %784 = vmatpush.msra.mxu0 %v2302_v8  ;;  %2315 = vtanh.f32 %v590_v0  ;;  %1183 = vperm.xlu1 %2275, %v2188_v5  }
  0xa7   : > { %v2306_v13 = vpop.eup %2305  ;;  %849 = vmatpush.msra.mxu1 %v2304_v10  ;;  %1188 = vperm.xlu0 %2274, %v2189_v7   ;;  %2317 = vtanh.f32 %v579_v9  ;;  %v3215_v0 = vpop.permute.xlu2 %311 }
  0xa8   : > { %v2308_v17 = vpop.eup %2307  ;;  %914 = vmatpush.msra.mxu2 %v2306_v13  ;;  %785 = vmatpush.msra.mxu0 %v2294_v37  ;;  %v516_v20 = vpop.permute.xlu0 %515  ;;  %2319 = vtanh.f32 %v580_v12  ;;  %v2183_v37 = vld [vmem:[%s4437_s4 + $0x98] sm:$0xff] }
  0xa9   : > { %v337_v21 = vpop.permute.xlu1 %336  ;;  %v2310_v22 = vpop.eup %2309  ;;  %979 = vmatpush.msra.mxu3 %v2308_v17  ;;  %850 = vmatpush.msra.mxu1 %v2296_v62  ;;  %v583_v23 = vadd.f32 %v516_v20, %v423_v14  ;;  %v584_v24 = vadd.f32 %v516_v20, %v424_v15  ;;  %v585_v25 = vadd.f32 %v516_v20, %v425_v16 }
  0xaa   : > { %v2312_v26 = vpop.eup %2311  ;;  %915 = vmatpush.msra.mxu2 %v2298_v2  ;;  %786 = vmatpush.msra.mxu0 %v3132_v36  ;;  %v586_v27 = vadd.f32 %v516_v20, %v426_v19  ;;  %v415_v36 = vmul.f32 %v3083_v49, %v337_v21  ;;  %v416_v38 = vmul.f32 %v3085_v50, %v337_v21  ;;  %v2227_v19 = vld [vmem:[%s4437_s4 + $0x178] sm:$0xff] }
  0xab   : > { %v2314_v3 = vpop.eup %2313  ;;  %980 = vmatpush.msra.mxu3 %v2300_v6  ;;  %851 = vmatpush.msra.mxu1 %v3138_v40  ;;  %2321 = vtanh.f32 %v583_v23  ;;  %v417_v39 = vmul.f32 %v3087_v51, %v337_v21  ;;  %v418_v41 = vmul.f32 %v3095_v59, %v337_v21  ;;  %v409_v6 = vmul.f32 %v3087_v51, %v3161_v4 }
  0xac   : > { %v2316_v31 = vpop.eup %2315  ;;  %916 = vmatpush.msra.mxu2 %v3145_v45  ;;  %2323 = vtanh.f32 %v584_v24  ;;  %787 = vmatpush.msra.mxu0 %v2310_v22  ;;  %v410_v15 = vmul.f32 %v3095_v59, %v3161_v4  ;;  %v2180_v4 = vld [vmem:[%s4437_s4 + $0x80] sm:$0xff]  ;;  %v2226_v22 = vld [vmem:[%s4437_s4 + $0x170] sm:$0xff] }
  0xad   : > { %981 = vmatpush.msra.mxu3 %v3151_v53  ;;  %2325 = vtanh.f32 %v585_v25  ;;  %852 = vmatpush.msra.mxu1 %v2312_v26  ;;  %v2318_v29 = vpop.eup %2317  ;;  %v569_v18 = vadd.f32 %v3190_v34, %v409_v6 }
  0xae   : > { %2327 = vtanh.f32 %v586_v27  ;;  %917 = vmatpush.msra.mxu2 %v2314_v3  ;;  %1168 = vperm.xlu1 %2275, %v2185_v30   ;;  %v2320_v40 = vpop.eup %2319  ;;  %v570_v21 = vadd.f32 %v3190_v34, %v410_v15 }
  0xaf   : > { %2329 = vtanh.f32 %v581_v28  ;;  %982 = vmatpush.msra.mxu3 %v2316_v31  ;;  %1173 = vperm.xlu0 %2274, %v2186_v33  }
  0xb0   : > { %2331 = vtanh.f32 %v582_v32  ;;  %1163 = vperm.xlu2 %2276, %v2184_v35   ;;  %v332_v43 = vpop.permute.xlu0 %331 }
  0xb1   : > { %v506_v42 = vpop.permute.xlu1 %505  ;;  %v2322_v44 = vpop.eup %2321  ;;  %v411_v1 = vmul.f32 %v3083_v49, %v332_v43  ;;  %v412_v2 = vmul.f32 %v3085_v50, %v332_v43  ;;  %v413_v5 = vmul.f32 %v3087_v51, %v332_v43  ;;  %v414_v7 = vmul.f32 %v3095_v59, %v332_v43  ;;  %v2225_v43 = vld [vmem:[%s4437_s4 + $0x168] sm:$0xff] }
  0xb2   : > { %v575_v45 = vadd.f32 %v506_v42, %v415_v36  ;;  %v576_v46 = vadd.f32 %v506_v42, %v416_v38  ;;  %v577_v47 = vadd.f32 %v506_v42, %v417_v39  ;;  %v2324_v48 = vpop.eup %2323  ;;  %v578_v52 = vadd.f32 %v506_v42, %v418_v41  ;;  %788 = vmatpush.msra.mxu0 %v2322_v44 }
  0xb3   : > { %v2326_v53 = vpop.eup %2325  ;;  %853 = vmatpush.msra.mxu1 %v2324_v48  ;;  %v395_v39 = vmul.f32 %v3083_v49, %v3215_v0  ;;  %v396_v42 = vmul.f32 %v3085_v50, %v3215_v0 }
  0xb4   : > { %2333 = vtanh.f32 %v575_v45  ;;  %v2328_v56 = vpop.eup %2327  ;;  %918 = vmatpush.msra.mxu2 %v2326_v53  ;;  %789 = vmatpush.msra.mxu0 %v2318_v29  ;;  %v481_v29 = vpop.permute.xlu2 %480 }
  0xb5   : > { %2335 = vtanh.f32 %v576_v46  ;;  %v2330_v58 = vpop.eup %2329  ;;  %983 = vmatpush.msra.mxu3 %v2328_v56  ;;  %854 = vmatpush.msra.mxu1 %v2320_v40  ;;  %v2224_v40 = vld [vmem:[%s4437_s4 + $0x160] sm:$0xff]  ;;  %v555_v45 = vadd.f32 %v481_v29, %v395_v39  ;;  %v2223_v46 = vld [vmem:[%s4437_s4 + $0x158] sm:$0xff]  ;;  %v556_v48 = vadd.f32 %v481_v29, %v396_v42 }
  0xb6   : > { %2337 = vtanh.f32 %v577_v47  ;;  %v2332_v62 = vpop.eup %2331  ;;  %919 = vmatpush.msra.mxu2 %v2330_v58  ;;  %1153 = vperm.xlu1 %2275, %v2182_v55   ;;  %v397_v55 = vmul.f32 %v3087_v51, %v3215_v0 }
  0xb7   : > { %2339 = vtanh.f32 %v578_v52  ;;  %984 = vmatpush.msra.mxu3 %v2332_v62  ;;  %1158 = vperm.xlu0 %2274, %v2183_v37  }
  0xb8   : > { %1148 = vperm.xlu2 %2276, %v2181_v61   ;;  %v501_v8 = vpop.permute.xlu0 %500  ;;  %2341 = vtanh.f32 %v567_v60  ;;  %v557_v6 = vadd.f32 %v481_v29, %v397_v55 }
  0xb9   : > { %v322_v9 = vpop.permute.xlu1 %321  ;;  %v571_v11 = vadd.f32 %v501_v8, %v411_v1  ;;  %v572_v12 = vadd.f32 %v501_v8, %v412_v2  ;;  %v573_v13 = vadd.f32 %v501_v8, %v413_v5  ;;  %2343 = vtanh.f32 %v568_v63 }
  0xba   : > { %v2334_v10 = vpop.eup %2333  ;;  %v574_v16 = vadd.f32 %v501_v8, %v414_v7  ;;  %v403_v24 = vmul.f32 %v3083_v49, %v322_v9  ;;  %v404_v25 = vmul.f32 %v3085_v50, %v322_v9  ;;  %v405_v26 = vmul.f32 %v3087_v51, %v322_v9  ;;  %v2221_v7 = vld [vmem:[%s4437_s4 + $0x148] sm:$0xff] }
  0xbb   : > { %v2336_v14 = vpop.eup %2335  ;;  %790 = vmatpush.msra.mxu0 %v2334_v10  ;;  %2345 = vtanh.f32 %v571_v11  ;;  %v406_v3 = vmul.f32 %v3095_v59, %v322_v9  ;;  %v398_v1 = vmul.f32 %v3095_v59, %v3215_v0  ;;  %v2222_v10 = vld [vmem:[%s4437_s4 + $0x150] sm:$0xff]  ;;  %v2220_v0 = vld [vmem:[%s4437_s4 + $0x140] sm:$0xff] }
  0xbc   : > { %v2338_v17 = vpop.eup %2337  ;;  %855 = vmatpush.msra.mxu1 %v2336_v14  ;;  %2347 = vtanh.f32 %v572_v12 }
  0xbd   : > { %v2340_v20 = vpop.eup %2339  ;;  %920 = vmatpush.msra.mxu2 %v2338_v17  ;;  %2349 = vtanh.f32 %v573_v13  ;;  %v558_v9 = vadd.f32 %v481_v29, %v398_v1 }
  0xbe   : > { %985 = vmatpush.msra.mxu3 %v2340_v20  ;;  %2351 = vtanh.f32 %v574_v16  ;;  %1656 = vperm.xlu1 %2275, %v2227_v19   ;;  %v2342_v23 = vpop.eup %2341 }
  0xbf   : > { %2353 = vtanh.f32 %v569_v18  ;;  %1143 = vperm.xlu0 %2274, %v2180_v4   ;;  %v2344_v27 = vpop.eup %2343 }
  0xc0   : > { %2355 = vtanh.f32 %v570_v21  ;;  %1651 = vperm.xlu2 %2276, %v2226_v22   ;;  %v317_v30 = vpop.permute.xlu0 %316 }
  0xc1   : > { %v491_v28 = vpop.permute.xlu1 %490  ;;  %v2346_v31 = vpop.eup %2345  ;;  %v399_v52 = vmul.f32 %v3083_v49, %v317_v30  ;;  %v400_v53 = vmul.f32 %v3085_v50, %v317_v30  ;;  %v401_v54 = vmul.f32 %v3087_v51, %v317_v30  ;;  %v402_v56 = vmul.f32 %v3095_v59, %v317_v30  ;;  %v2217_v30 = vld [vmem:[%s4437_s4 + $0x128] sm:$0xff] }
  0xc2   : > { %v563_v32 = vadd.f32 %v491_v28, %v403_v24  ;;  %v564_v33 = vadd.f32 %v491_v28, %v404_v25  ;;  %v565_v34 = vadd.f32 %v491_v28, %v405_v26  ;;  %v2348_v35 = vpop.eup %2347  ;;  %v566_v36 = vadd.f32 %v491_v28, %v406_v3  ;;  %791 = vmatpush.msra.mxu0 %v2346_v31  ;;  %v2218_v25 = vld [vmem:[%s4437_s4 + $0x130] sm:$0xff]  ;;  %v2219_v3 = vld [vmem:[%s4437_s4 + $0x138] sm:$0xff] }
  0xc3   : > { %v2350_v38 = vpop.eup %2349  ;;  %856 = vmatpush.msra.mxu1 %v2348_v35 }
  0xc4   : > { %2357 = vtanh.f32 %v563_v32  ;;  %v2352_v41 = vpop.eup %2351  ;;  %921 = vmatpush.msra.mxu2 %v2350_v38  ;;  %792 = vmatpush.msra.mxu0 %v2342_v23 }
  0xc5   : > { %2359 = vtanh.f32 %v564_v33  ;;  %v2354_v44 = vpop.eup %2353  ;;  %986 = vmatpush.msra.mxu3 %v2352_v41  ;;  %857 = vmatpush.msra.mxu1 %v2344_v27  ;;  %v297_v27 = vpop.permute.xlu2 %296 }
  0xc6   : > { %2361 = vtanh.f32 %v565_v34  ;;  %v2356_v47 = vpop.eup %2355  ;;  %922 = vmatpush.msra.mxu2 %v2354_v44  ;;  %1641 = vperm.xlu1 %2275, %v2224_v40   ;;  %v383_v32 = vmul.f32 %v3083_v49, %v297_v27  ;;  %v384_v33 = vmul.f32 %v3085_v50, %v297_v27 }
  0xc7   : > { %2363 = vtanh.f32 %v566_v36  ;;  %987 = vmatpush.msra.mxu3 %v2356_v47  ;;  %1646 = vperm.xlu0 %2274, %v2225_v43  }
  0xc8   : > { %1636 = vperm.xlu2 %2276, %v2223_v46   ;;  %v486_v57 = vpop.permute.xlu0 %485  ;;  %2365 = vtanh.f32 %v555_v45  ;;  %v2215_v45 = vld [vmem:[%s4437_s4 + $0x118] sm:$0xff] }
  0xc9   : > { %v307_v37 = vpop.permute.xlu1 %306  ;;  %v559_v60 = vadd.f32 %v486_v57, %v399_v52  ;;  %v560_v61 = vadd.f32 %v486_v57, %v400_v53  ;;  %v561_v62 = vadd.f32 %v486_v57, %v401_v54  ;;  %2367 = vtanh.f32 %v556_v48  ;;  %v2214_v53 = vld [vmem:[%s4437_s4 + $0x110] sm:$0xff] }
  0xca   : > { %v2358_v58 = vpop.eup %2357  ;;  %v562_v2 = vadd.f32 %v486_v57, %v402_v56  ;;  %v391_v12 = vmul.f32 %v3083_v49, %v307_v37  ;;  %v392_v13 = vmul.f32 %v3085_v50, %v307_v37  ;;  %v393_v14 = vmul.f32 %v3087_v51, %v307_v37 }
  0xcb   : > { %v2360_v63 = vpop.eup %2359  ;;  %793 = vmatpush.msra.mxu0 %v2358_v58  ;;  %2369 = vtanh.f32 %v559_v60  ;;  %v394_v16 = vmul.f32 %v3095_v59, %v307_v37  ;;  %v386_v54 = vmul.f32 %v3095_v59, %v297_v27  ;;  %v2212_v37 = vld [vmem:[%s4437_s4 + $0x100] sm:$0xff] }
  0xcc   : > { %v2362_v5 = vpop.eup %2361  ;;  %858 = vmatpush.msra.mxu1 %v2360_v63  ;;  %2371 = vtanh.f32 %v560_v61  ;;  %v671_v63 = vld [vmem:[%s4436_s3] sm:$0xff] }
  0xcd   : > { %v2364_v8 = vpop.eup %2363  ;;  %923 = vmatpush.msra.mxu2 %v2362_v5  ;;  %2373 = vtanh.f32 %v561_v62 }
  0xce   : > { %988 = vmatpush.msra.mxu3 %v2364_v8  ;;  %2375 = vtanh.f32 %v562_v2  ;;  %1626 = vperm.xlu1 %2275, %v2221_v7   ;;  %v2366_v11 = vpop.eup %2365  ;;  %v672_v7 = vld [vmem:[%s4436_s3 + $0x8] sm:$0xff]  ;;  %v673_v8 = vld [vmem:[%s4436_s3 + $0x10] sm:$0xff] }
  0xcf   : > { %2377 = vtanh.f32 %v557_v6  ;;  %1631 = vperm.xlu0 %2274, %v2222_v10   ;;  %v2368_v15 = vpop.eup %2367  ;;  %v1984_v6 = vld [vmem:[%s4439_s6] sm:$0x3] }
  0xd0   : > { %2379 = vtanh.f32 %v558_v9  ;;  %1621 = vperm.xlu2 %2276, %v2220_v0   ;;  %v302_v18 = vpop.permute.xlu0 %301  ;;  %v674_v9 = vld [vmem:[%s4436_s3 + $0x18] sm:$0xff]  ;;  %v675_v10 = vld [vmem:[%s4436_s3 + $0x20] sm:$0xff]  ;;  %v676_v0 = vld [vmem:[%s4436_s3 + $0x28] sm:$0xff] }
  0xd1   : > { %v476_v17 = vpop.permute.xlu1 %475  ;;  %v2370_v19 = vpop.eup %2369  ;;  %v387_v36 = vmul.f32 %v3083_v49, %v302_v18  ;;  %v388_v40 = vmul.f32 %v3085_v50, %v302_v18  ;;  %v389_v43 = vmul.f32 %v3087_v51, %v302_v18  ;;  %v390_v47 = vmul.f32 %v3095_v59, %v302_v18  ;;  %v2216_v49 = vld [vmem:[%s4437_s4 + $0x120] sm:$0xff]  ;;  %v2213_v59 = vld [vmem:[%s4437_s4 + $0x108] sm:$0xff] }
  0xd2   : > { %v551_v20 = vadd.f32 %v476_v17, %v391_v12  ;;  %v552_v21 = vadd.f32 %v476_v17, %v392_v13  ;;  %v553_v4 = vadd.f32 %v476_v17, %v393_v14  ;;  %v2372_v22 = vpop.eup %2371  ;;  %v554_v23 = vadd.f32 %v476_v17, %v394_v16  ;;  %794 = vmatpush.msra.mxu0 %v2370_v19  ;;  %v678_v12 = vld [vmem:[%s4436_s3 + $0x38] sm:$0xff]  ;;  %v679_v13 = vld [vmem:[%s4436_s3 + $0x40] sm:$0xff]  ;;  %v680_v14 = vld [vmem:[%s4436_s3 + $0x48] sm:$0xff] }
  0xd3   : > { %v2374_v24 = vpop.eup %2373  ;;  %859 = vmatpush.msra.mxu1 %v2372_v22  ;;  %v385_v50 = vmul.f32 %v3087_v51, %v297_v27  ;;  %v682_v16 = vld [vmem:[%s4436_s3 + $0x58] sm:$0xff]  ;;  %v683_v17 = vld [vmem:[%s4436_s3 + $0x60] sm:$0xff]  ;;  %v684_v18 = vld [vmem:[%s4436_s3 + $0x68] sm:$0xff] }
  0xd4   : > { %2381 = vtanh.f32 %v551_v20  ;;  %v2376_v26 = vpop.eup %2375  ;;  %924 = vmatpush.msra.mxu2 %v2374_v24  ;;  %795 = vmatpush.msra.mxu0 %v2366_v11  ;;  %v677_v11 = vld [vmem:[%s4436_s3 + $0x30] sm:$0xff]  ;;  %v686_v20 = vld [vmem:[%s4436_s3 + $0x78] sm:$0xff] }
  0xd5   : > { %2383 = vtanh.f32 %v552_v21  ;;  %v2378_v28 = vpop.eup %2377  ;;  %989 = vmatpush.msra.mxu3 %v2376_v26  ;;  %860 = vmatpush.msra.mxu1 %v2368_v15  ;;  %v681_v15 = vld [vmem:[%s4436_s3 + $0x50] sm:$0xff] }
  0xd6   : > { %2385 = vtanh.f32 %v553_v4  ;;  %v2380_v31 = vpop.eup %2379  ;;  %925 = vmatpush.msra.mxu2 %v2378_v28  ;;  %1611 = vperm.xlu1 %2275, %v2218_v25   ;;  %v685_v19 = vld [vmem:[%s4436_s3 + $0x70] sm:$0xff] }
  0xd7   : > { %2387 = vtanh.f32 %v554_v23  ;;  %990 = vmatpush.msra.mxu3 %v2380_v31  ;;  %1616 = vperm.xlu0 %2274, %v2219_v3  }
  0xd8   : > { %1606 = vperm.xlu2 %2276, %v2217_v30   ;;  %v471_v35 = vpop.permute.xlu0 %470 }
  0xd9   : > { %v466_v34 = vpop.permute.xlu1 %465  ;;  %v547_v44 = vadd.f32 %v471_v35, %v387_v36  ;;  %v548_v48 = vadd.f32 %v471_v35, %v388_v40  ;;  %v549_v52 = vadd.f32 %v471_v35, %v389_v43  ;;  %v550_v55 = vadd.f32 %v471_v35, %v390_v47 }
  0xda   : > { %v2382_v29 = vpop.eup %2381  ;;  %v543_v38 = vadd.f32 %v466_v34, %v383_v32  ;;  %v544_v41 = vadd.f32 %v466_v34, %v384_v33  ;;  %v545_v56 = vadd.f32 %v466_v34, %v385_v50  ;;  %v546_v57 = vadd.f32 %v466_v34, %v386_v54 }
  0xdb   : > { %v2384_v39 = vpop.eup %2383  ;;  %796 = vmatpush.msra.mxu0 %v2382_v29 }
  0xdc   : > { %v2386_v42 = vpop.eup %2385  ;;  %861 = vmatpush.msra.mxu1 %v2384_v39  ;;  %2389 = vtanh.f32 %v543_v38 }
  0xdd   : > { %v2388_v46 = vpop.eup %2387  ;;  %926 = vmatpush.msra.mxu2 %v2386_v42  ;;  %2391 = vtanh.f32 %v544_v41  ;;  %v3395_v42 = vpop.permute.xlu2 %780 }
  0xde   : > { %991 = vmatpush.msra.mxu3 %v2388_v46  ;;  %1596 = vperm.xlu1 %2275, %v2215_v45   ;;  %2393 = vtanh.f32 %v547_v44 }
  0xdf   : > { %1601 = vperm.xlu0 %2274, %v2216_v49   ;;  %2395 = vtanh.f32 %v548_v48 }
  0xe0   : > { %1591 = vperm.xlu2 %2276, %v2214_v53   ;;  %2397 = vtanh.f32 %v549_v52  ;;  %v3409_v49 = vpop.permute.xlu0 %775 }
  0xe1   : > { %2399 = vtanh.f32 %v550_v55  ;;  %v3407_v48 = vpop.permute.xlu1 %770 }
  0xe2   : > { %v2390_v51 = vpop.eup %2389  ;;  %2401 = vtanh.f32 %v545_v56 }
  0xe3   : > { %v2392_v58 = vpop.eup %2391  ;;  %2403 = vtanh.f32 %v546_v57 }
  0xe4   : > { %v2394_v60 = vpop.eup %2393 }
  0xe5   : > { %v2396_v61 = vpop.eup %2395  ;;  %797 = vmatpush.msra.mxu0 %v2394_v60  ;;  %v3405_v47 = vpop.permute.xlu2 %765 }
  0xe6   : > { %1581 = vperm.xlu1 %2275, %v2212_v37   ;;  %v2398_v62 = vpop.eup %2397  ;;  %862 = vmatpush.msra.mxu1 %v2396_v61 }
  0xe7   : > { %1586 = vperm.xlu0 %2274, %v2213_v59   ;;  %v2400_v1 = vpop.eup %2399  ;;  %927 = vmatpush.msra.mxu2 %v2398_v62 }
  0xe8   : > { %798 = vmatpush.msra.mxu0 %v2390_v51  ;;  %v2402_v2 = vpop.eup %2401  ;;  %992 = vmatpush.msra.mxu3 %v2400_v1  ;;  %v3431_v59 = vpop.permute.xlu0 %760 }
  0xe9   : > { %863 = vmatpush.msra.mxu1 %v2392_v58  ;;  %v2404_v5 = vpop.eup %2403  ;;  %928 = vmatpush.msra.mxu2 %v2402_v2  ;;  %v3421_v56 = vpop.permute.xlu1 %755 }
  0xea   : > { %799 = vmatmul.f32.vlgmr.msra.gmra.mxu0 %v671_v63  ;;  %993 = vmatpush.msra.mxu3 %v2404_v5 }
  0xeb   : > { %864 = vmatmul.f32.vlgmr.msra.gmra.mxu1 %v671_v63  ;;  %929 = vmatmul.f32.vlgmr.msra.gmra.mxu2 %v671_v63 }
  0xec   : > { %994 = vmatmul.f32.vlgmr.msra.gmra.mxu3 %v671_v63  ;;  %1987 = vperm.xlu2 %2276, %v1984_v6  }
  0xed   : > { %v3419_v55 = vpop.permute.xlu2 %750 }
  0xf0   : > { %v3445_v5 = vpop.permute.xlu0 %745 }
  0xf1   : > { %v3443_v2 = vpop.permute.xlu1 %740 }
  0xf2   : > { %802 = vmatmul.f32.gmra.mxu0 %v672_v7 }
  0xf3   : > { %867 = vmatmul.f32.gmra.mxu1 %v672_v7  ;;  %932 = vmatmul.f32.gmra.mxu2 %v672_v7 }
  0xf4   : > { %997 = vmatmul.f32.gmra.mxu3 %v672_v7 }
  0xf5   : > { %v3441_v1 = vpop.permute.xlu2 %735 }
  0xfa   : > { %805 = vmatmul.f32.gmra.mxu0 %v673_v8 }
  0xfb   : > { %870 = vmatmul.f32.gmra.mxu1 %v673_v8  ;;  %935 = vmatmul.f32.gmra.mxu2 %v673_v8 }
  0xfc   : > { %1000 = vmatmul.f32.gmra.mxu3 %v673_v8 }
 0x102   : > { %808 = vmatmul.f32.gmra.mxu0 %v674_v9 }
 0x103   : > { %873 = vmatmul.f32.gmra.mxu1 %v674_v9  ;;  %938 = vmatmul.f32.gmra.mxu2 %v674_v9 }
 0x104   : > { %1003 = vmatmul.f32.gmra.mxu3 %v674_v9 }
 0x10a   : > { %811 = vmatmul.f32.gmra.mxu0 %v675_v10 }
 0x10b   : > { %876 = vmatmul.f32.gmra.mxu1 %v675_v10  ;;  %941 = vmatmul.f32.gmra.mxu2 %v675_v10 }
 0x10c   : > { %1006 = vmatmul.f32.gmra.mxu3 %v675_v10  ;;  %v3455_v10 = vpop.permute.xlu2 %720 }
 0x112   : > { %814 = vmatmul.f32.gmra.mxu0 %v676_v0 }
 0x113   : > { %879 = vmatmul.f32.gmra.mxu1 %v676_v0  ;;  %944 = vmatmul.f32.gmra.mxu2 %v676_v0 }
 0x114   : > { %1009 = vmatmul.f32.gmra.mxu3 %v676_v0  ;;  %v3457_v0 = vpop.permute.xlu1 %725 }
 0x11a   : > { %817 = vmatmul.f32.gmra.mxu0 %v677_v11 }
 0x11b   : > { %882 = vmatmul.f32.gmra.mxu1 %v677_v11  ;;  %947 = vmatmul.f32.gmra.mxu2 %v677_v11 }
 0x11c   : > { %1012 = vmatmul.f32.gmra.mxu3 %v677_v11  ;;  %v3459_v11 = vpop.permute.xlu0 %730 }
 0x122   : > { %820 = vmatmul.f32.gmra.mxu0 %v678_v12 }
 0x123   : > { %885 = vmatmul.f32.gmra.mxu1 %v678_v12  ;;  %950 = vmatmul.f32.gmra.mxu2 %v678_v12 }
 0x124   : > { %1015 = vmatmul.f32.gmra.mxu3 %v678_v12 }
 0x12a   : > { %823 = vmatmul.f32.gmra.mxu0 %v679_v13 }
 0x12b   : > { %888 = vmatmul.f32.gmra.mxu1 %v679_v13  ;;  %953 = vmatmul.f32.gmra.mxu2 %v679_v13 }
 0x12c   : > { %1018 = vmatmul.f32.gmra.mxu3 %v679_v13 }
 0x132   : > { %826 = vmatmul.f32.gmra.mxu0 %v680_v14 }
 0x133   : > { %891 = vmatmul.f32.gmra.mxu1 %v680_v14  ;;  %956 = vmatmul.f32.gmra.mxu2 %v680_v14 }
 0x134   : > { %1021 = vmatmul.f32.gmra.mxu3 %v680_v14 }
 0x13a   : > { %829 = vmatmul.f32.gmra.mxu0 %v681_v15 }
 0x13b   : > { %894 = vmatmul.f32.gmra.mxu1 %v681_v15  ;;  %959 = vmatmul.f32.gmra.mxu2 %v681_v15 }
 0x13c   : > { %1024 = vmatmul.f32.gmra.mxu3 %v681_v15 }
 0x142   : > { %832 = vmatmul.f32.gmra.mxu0 %v682_v16 }
 0x143   : > { %897 = vmatmul.f32.gmra.mxu1 %v682_v16  ;;  %962 = vmatmul.f32.gmra.mxu2 %v682_v16 }
 0x144   : > { %1027 = vmatmul.f32.gmra.mxu3 %v682_v16  ;;  %v3469_v16 = vpop.permute.xlu2 %705 }
 0x145   : > { %4469 = vst [vmem:[#allocation11_spill] sm:$0xff] %v3469_v16 }
 0x14a   : > { %835 = vmatmul.f32.gmra.mxu0 %v683_v17 }
 0x14b   : > { %900 = vmatmul.f32.gmra.mxu1 %v683_v17  ;;  %965 = vmatmul.f32.gmra.mxu2 %v683_v17 }
 0x14c   : > { %1030 = vmatmul.f32.gmra.mxu3 %v683_v17  ;;  %v3471_v17 = vpop.permute.xlu1 %710 }
 0x14d   : > { %4470 = vst [vmem:[#allocation12_spill] sm:$0xff] %v3471_v17 }
 0x152   : > { %838 = vmatmul.f32.gmra.mxu0 %v684_v18 }
 0x153   : > { %903 = vmatmul.f32.gmra.mxu1 %v684_v18  ;;  %968 = vmatmul.f32.gmra.mxu2 %v684_v18 }
 0x154   : > { %1033 = vmatmul.f32.gmra.mxu3 %v684_v18 }
 0x15a   : > { %841 = vmatmul.f32.gmra.mxu0 %v685_v19 }
 0x15b   : > { %906 = vmatmul.f32.gmra.mxu1 %v685_v19  ;;  %971 = vmatmul.f32.gmra.mxu2 %v685_v19 }
 0x15c   : > { %1036 = vmatmul.f32.gmra.mxu3 %v685_v19 }
 0x162   : > { %844 = vmatmul.f32.gmra.mxu0 %v686_v20 }
 0x163   : > { %909 = vmatmul.f32.gmra.mxu1 %v686_v20  ;;  %974 = vmatmul.f32.gmra.mxu2 %v686_v20 }
 0x164   : > { %1039 = vmatmul.f32.gmra.mxu3 %v686_v20 }
 0x167   : > { %v800_v21 = vpop.f32.mrf.mxu0 }
 0x168   : > { %v865_v4 = vpop.f32.mrf.mxu1  ;;  %v801_v18 = vadd.f32 %v800_v21, %v3469_v16 }
 0x169   : > { %v866_v19 = vadd.f32 %v865_v4, %v3469_v16 }
 0x16a   : > { %2405 = vtanh.f32 %v801_v18 }
 0x16b   : > { %2407 = vtanh.f32 %v866_v19 }
 0x16e   : > { %v3357_v22 = vpop.f32.mrf.mxu2 }
 0x16f   : > { %4463 = vst [vmem:[#allocation5_spill] sm:$0xff] %v3357_v22  ;;  %v3359_v23 = vpop.f32.mrf.mxu3  ;;  %v803_v24 = vpop.f32.mrf.mxu0 }
 0x170   : > { %4464 = vst [vmem:[#allocation6_spill] sm:$0xff] %v3359_v23  ;;  %v3361_v25 = vpop.f32.mrf.mxu1  ;;  %v804_v22 = vadd.f32 %v803_v24, %v3471_v17 }
 0x172   : > { %2409 = vtanh.f32 %v804_v22  ;;  %v3504_v22 = vpop.eup %2405 }
 0x173   : > { %4472 = vst [vmem:[#allocation14_spill] sm:$0xff] %v3504_v22 }
 0x176   : > { %v3363_v26 = vpop.f32.mrf.mxu2 }
 0x177   : > { %4465 = vst [vmem:[#allocation7_spill] sm:$0xff] %v3363_v26  ;;  %v3365_v27 = vpop.f32.mrf.mxu3  ;;  %v3367_v3 = vpop.f32.mrf.mxu0 }
 0x178   : > { %4466 = vst [vmem:[#allocation8_spill] sm:$0xff] %v3365_v27  ;;  %v3369_v28 = vpop.f32.mrf.mxu1 }
 0x17e   : > { %v3371_v30 = vpop.f32.mrf.mxu2 }
 0x17f   : > { %4467 = vst [vmem:[#allocation9_spill] sm:$0xff] %v3371_v30  ;;  %v3373_v31 = vpop.f32.mrf.mxu3  ;;  %v3375_v32 = vpop.f32.mrf.mxu0  ;;  %v869_v30 = vadd.f32 %v3361_v25, %v3471_v17 }
 0x180   : > { %4468 = vst [vmem:[#allocation10_spill] sm:$0xff] %v3373_v31  ;;  %v3377_v33 = vpop.f32.mrf.mxu1  ;;  %v3484_v31 = vpop.permute.xlu0 %715  ;;  %v810_v24 = vadd.f32 %v3375_v32, %v3455_v10 }
 0x181   : > { %4471 = vst [vmem:[#allocation13_spill] sm:$0xff] %v3484_v31  ;;  %v807_v21 = vadd.f32 %v3367_v3, %v3484_v31  ;;  %v872_v4 = vadd.f32 %v3369_v28, %v3484_v31  ;;  %2411 = vtanh.f32 %v869_v30  ;;  %v875_v16 = vadd.f32 %v3377_v33, %v3455_v10  ;;  %v3512_v33 = vpop.eup %2407 }
 0x182   : > { %4473 = vst [vmem:[#allocation15_spill] sm:$0xff] %v3512_v33 }
 0x183   : > { %2413 = vtanh.f32 %v807_v21 }
 0x184   : > { %2415 = vtanh.f32 %v872_v4 }
 0x185   : > { %2417 = vtanh.f32 %v810_v24 }
 0x186   : > { %v3379_v34 = vpop.f32.mrf.mxu2  ;;  %2419 = vtanh.f32 %v875_v16 }
 0x187   : > { %v3381_v35 = vpop.f32.mrf.mxu3  ;;  %v3383_v29 = vpop.f32.mrf.mxu0 }
 0x188   : > { %v3385_v36 = vpop.f32.mrf.mxu1  ;;  %v813_v25 = vadd.f32 %v3383_v29, %v3457_v0 }
 0x189   : > { %v878_v3 = vadd.f32 %v3385_v36, %v3457_v0  ;;  %v3516_v36 = vpop.eup %2409 }
 0x18a   : > { %4474 = vst [vmem:[#allocation16_spill] sm:$0xff] %v3516_v36  ;;  %2421 = vtanh.f32 %v813_v25  ;;  %v3520_v4 = vpop.eup %2411 }
 0x18b   : > { %4475 = vst [vmem:[#allocation17_spill] sm:$0xff] %v3520_v4  ;;  %2423 = vtanh.f32 %v878_v3  ;;  %v3524_v24 = vpop.eup %2413 }
 0x18c   : > { %4476 = vst [vmem:[#allocation18_spill] sm:$0xff] %v3524_v24  ;;  %v3528_v33 = vpop.eup %2415 }
 0x18d   : > { %4477 = vst [vmem:[#allocation19_spill] sm:$0xff] %v3528_v33  ;;  %v3532_v25 = vpop.eup %2417 }
 0x18e   : > { %v3387_v38 = vpop.f32.mrf.mxu2  ;;  %4478 = vst [vmem:[#allocation20_spill] sm:$0xff] %v3532_v25  ;;  %v3536_v3 = vpop.eup %2419 }
 0x18f   : > { %v3389_v39 = vpop.f32.mrf.mxu3  ;;  %v3391_v40 = vpop.f32.mrf.mxu0  ;;  %4479 = vst [vmem:[#allocation21_spill] sm:$0xff] %v3536_v3 }
 0x190   : > { %v3393_v41 = vpop.f32.mrf.mxu1  ;;  %v816_v28 = vadd.f32 %v3391_v40, %v3459_v11 }
 0x191   : > { %v881_v29 = vadd.f32 %v3393_v41, %v3459_v11 }
 0x192   : > { %2425 = vtanh.f32 %v816_v28 }
 0x193   : > { %2427 = vtanh.f32 %v881_v29  ;;  %v3544_v29 = vpop.eup %2421 }
 0x194   : > { %4480 = vst [vmem:[#allocation22_spill] sm:$0xff] %v3544_v29  ;;  %v3548_v4 = vpop.eup %2423 }
 0x195   : > { %4481 = vst [vmem:[#allocation23_spill] sm:$0xff] %v3548_v4 }
 0x196   : > { %v3397_v43 = vpop.f32.mrf.mxu2 }
 0x197   : > { %v3399_v44 = vpop.f32.mrf.mxu3  ;;  %v3401_v45 = vpop.f32.mrf.mxu0 }
 0x198   : > { %v3403_v46 = vpop.f32.mrf.mxu1  ;;  %v819_v21 = vadd.f32 %v3401_v45, %v3441_v1 }
 0x199   : > { %v884_v40 = vadd.f32 %v3403_v46, %v3441_v1 }
 0x19a   : > { %2429 = vtanh.f32 %v819_v21 }
 0x19b   : > { %2431 = vtanh.f32 %v884_v40  ;;  %v3552_v40 = vpop.eup %2425 }
 0x19c   : > { %v3556_v36 = vpop.eup %2427 }
 0x19d   : > { %4482 = vst [vmem:[#allocation24_spill] sm:$0xff] %v3556_v36 }
 0x19e   : > { %v3411_v50 = vpop.f32.mrf.mxu2 }
 0x19f   : > { %v3413_v52 = vpop.f32.mrf.mxu3  ;;  %v3415_v53 = vpop.f32.mrf.mxu0 }
 0x1a0   : > { %v3417_v54 = vpop.f32.mrf.mxu1  ;;  %v822_v16 = vadd.f32 %v3415_v53, %v3443_v2 }
 0x1a1   : > { %v887_v41 = vadd.f32 %v3417_v54, %v3443_v2 }
 0x1a2   : > { %2433 = vtanh.f32 %v822_v16  ;;  %v3560_v16 = vpop.eup %2429 }
 0x1a3   : > { %2435 = vtanh.f32 %v887_v41  ;;  %v3564_v33 = vpop.eup %2431 }
 0x1a6   : > { %v3423_v57 = vpop.f32.mrf.mxu2 }
 0x1a7   : > { %v3425_v51 = vpop.f32.mrf.mxu3  ;;  %v3427_v37 = vpop.f32.mrf.mxu0 }
 0x1a8   : > { %v3429_v58 = vpop.f32.mrf.mxu1  ;;  %v825_v45 = vadd.f32 %v3427_v37, %v3445_v5 }
 0x1a9   : > { %v890_v46 = vadd.f32 %v3429_v58, %v3445_v5 }
 0x1aa   : > { %2437 = vtanh.f32 %v825_v45  ;;  %v3568_v45 = vpop.eup %2433 }
 0x1ab   : > { %2439 = vtanh.f32 %v890_v46  ;;  %v3572_v46 = vpop.eup %2435 }
 0x1ae   : > { %v3433_v60 = vpop.f32.mrf.mxu2 }
 0x1af   : > { %v3435_v61 = vpop.f32.mrf.mxu3  ;;  %v3437_v62 = vpop.f32.mrf.mxu0 }
 0x1b0   : > { %v3439_v63 = vpop.f32.mrf.mxu1  ;;  %v828_v54 = vadd.f32 %v3437_v62, %v3419_v55  ;;  %v3576_v24 = vpop.eup %2437 }
 0x1b1   : > { %v893_v37 = vadd.f32 %v3439_v63, %v3419_v55 }
 0x1b2   : > { %2441 = vtanh.f32 %v828_v54 }
 0x1b3   : > { %2443 = vtanh.f32 %v893_v37 }
 0x1b6   : > { %v3447_v6 = vpop.f32.mrf.mxu2 }
 0x1b7   : > { %v3449_v7 = vpop.f32.mrf.mxu3  ;;  %v3451_v8 = vpop.f32.mrf.mxu0 }
 0x1b8   : > { %v3453_v9 = vpop.f32.mrf.mxu1  ;;  %v831_v58 = vadd.f32 %v3451_v8, %v3421_v56 }
 0x1b9   : > { %v896_v62 = vadd.f32 %v3453_v9, %v3421_v56 }
 0x1ba   : > { %2445 = vtanh.f32 %v831_v58 }
 0x1bb   : > { %2447 = vtanh.f32 %v896_v62 }
 0x1be   : > { %v3461_v12 = vpop.f32.mrf.mxu2 }
 0x1bf   : > { %v3463_v13 = vpop.f32.mrf.mxu3  ;;  %v3465_v14 = vpop.f32.mrf.mxu0 }
 0x1c0   : > { %v3467_v15 = vpop.f32.mrf.mxu1  ;;  %v834_v41 = vadd.f32 %v3465_v14, %v3431_v59 }
 0x1c1   : > { %v899_v63 = vadd.f32 %v3467_v15, %v3431_v59  ;;  %v3578_v15 = vpop.eup %2439 }
 0x1c2   : > { %2449 = vtanh.f32 %v834_v41  ;;  %v3582_v25 = vpop.eup %2441 }
 0x1c3   : > { %2451 = vtanh.f32 %v899_v63 }
 0x1c6   : > { %v3475_v20 = vpop.f32.mrf.mxu2 }
 0x1c7   : > { %v3477_v23 = vpop.f32.mrf.mxu3  ;;  %v3480_v27 = vpop.f32.mrf.mxu0 }
 0x1c8   : > { %v3482_v26 = vpop.f32.mrf.mxu1  ;;  %v837_v8 = vadd.f32 %v3480_v27, %v3405_v47 }
 0x1c9   : > { %v902_v9 = vadd.f32 %v3482_v26, %v3405_v47  ;;  %v3585_v26 = vpop.eup %2443 }
 0x1ca   : > { %2453 = vtanh.f32 %v837_v8  ;;  %v3588_v41 = vpop.eup %2445 }
 0x1cb   : > { %2455 = vtanh.f32 %v902_v9  ;;  %v3592_v63 = vpop.eup %2447 }
 0x1cc   : > { %v2450_v8 = vpop.eup %2449 }
 0x1ce   : > { %v3500_v18 = vpop.f32.mrf.mxu2 }
 0x1cf   : > { %v3502_v19 = vpop.f32.mrf.mxu3  ;;  %v3508_v30 = vpop.f32.mrf.mxu0 }
 0x1d0   : > { %v3510_v32 = vpop.f32.mrf.mxu1  ;;  %v840_v17 = vadd.f32 %v3508_v30, %v3407_v48 }
 0x1d6   : > { %v3540_v28 = vpop.f32.mrf.mxu2 }
 0x1d7   : > { %v3542_v53 = vpop.f32.mrf.mxu3  ;;  %v842_v21 = vpop.f32.mrf.mxu0 }
 0x1d8   : > { %v907_v22 = vpop.f32.mrf.mxu1  ;;  %v843_v62 = vadd.f32 %v842_v21, %v3409_v49  ;;  %v2452_v21 = vpop.eup %2451 }
 0x1d9   : > { %v908_v4 = vadd.f32 %v907_v22, %v3409_v49  ;;  %v2454_v29 = vpop.eup %2453 }
 0x1de   : > { %v972_v54 = vpop.f32.mrf.mxu2 }
 0x1df   : > { %v1037_v14 = vpop.f32.mrf.mxu3  ;;  %v845_v37 = vpop.f32.mrf.mxu0  ;;  %v973_v22 = vadd.f32 %v972_v54, %v3409_v49  ;;  %v967_v54 = vadd.f32 %v3500_v18, %v3405_v47 }
 0x1e0   : > { %v910_v3 = vpop.f32.mrf.mxu1  ;;  %v846_v58 = vadd.f32 %v845_v37, %v3395_v42  ;;  %v1038_v31 = vadd.f32 %v1037_v14, %v3409_v49  ;;  %v1032_v49 = vadd.f32 %v3502_v19, %v3405_v47  ;;  %v961_v14 = vadd.f32 %v3461_v12, %v3421_v56 }
 0x1e1   : > { %v911_v27 = vadd.f32 %v910_v3, %v3395_v42  ;;  %v905_v3 = vadd.f32 %v3510_v32, %v3407_v48  ;;  %v1026_v47 = vadd.f32 %v3463_v13, %v3421_v56  ;;  %v958_v19 = vadd.f32 %v3447_v6, %v3419_v55 }
 0x1e2   : > { %2457 = vtanh.f32 %v846_v58  ;;  %v2456_v58 = vpop.eup %2455  ;;  %v955_v56 = vadd.f32 %v3433_v60, %v3445_v5  ;;  %v1020_v6 = vadd.f32 %v3435_v61, %v3445_v5  ;;  %v949_v5 = vadd.f32 %v3411_v50, %v3441_v1 }
 0x1e3   : > { %2459 = vtanh.f32 %v911_v27  ;;  %v970_v27 = vadd.f32 %v3540_v28, %v3407_v48 }
 0x1e4   : > { %2461 = vtanh.f32 %v843_v62  ;;  %v1035_v62 = vadd.f32 %v3542_v53, %v3407_v48  ;;  %v1029_v53 = vadd.f32 %v3477_v23, %v3431_v59 }
 0x1e5   : > { %2463 = vtanh.f32 %v908_v4 }
 0x1e6   : > { %v975_v37 = vpop.f32.mrf.mxu2  ;;  %2465 = vtanh.f32 %v840_v17 }
 0x1e7   : > { %v1040_v9 = vpop.f32.mrf.mxu3  ;;  %v976_v36 = vadd.f32 %v975_v37, %v3395_v42  ;;  %2467 = vtanh.f32 %v905_v3  ;;  %v4491_v37 = vld [vmem:[#allocation8_spill] sm:$0xff] }
 0x1e8   : > { %v1041_v30 = vadd.f32 %v1040_v9, %v3395_v42  ;;  %v2458_v32 = vpop.eup %2457 }
 0x1e9   : > { %2469 = vtanh.f32 %v976_v36  ;;  %v2460_v4 = vpop.eup %2459  ;;  %1221 = vmatpush.msrb.mxu0 %v2458_v32  ;;  %v964_v36 = vadd.f32 %v3475_v20, %v3431_v59  ;;  %v1023_v59 = vadd.f32 %v3449_v7, %v3419_v55  ;;  %v952_v55 = vadd.f32 %v3423_v57, %v3443_v2  ;;  %v4494_v32 = vld [vmem:[#allocation5_spill] sm:$0xff] }
 0x1ea   : > { %2471 = vtanh.f32 %v1041_v30  ;;  %v2462_v17 = vpop.eup %2461  ;;  %1286 = vmatpush.msrb.mxu1 %v2460_v4  ;;  %v1017_v7 = vadd.f32 %v3425_v51, %v3443_v2  ;;  %v946_v2 = vadd.f32 %v3397_v43, %v3459_v11  ;;  %v4495_v4 = vld [vmem:[#allocation21_spill] sm:$0xff] }
 0x1eb   : > { %2473 = vtanh.f32 %v973_v22  ;;  %v2464_v42 = vpop.eup %2463  ;;  %1222 = vmatpush.msrb.mxu0 %v2462_v17  ;;  %v4492_v22 = vld [vmem:[#allocation20_spill] sm:$0xff]  ;;  %v4496_v17 = vld [vmem:[#allocation6_spill] sm:$0xff] }
 0x1ec   : > { %2475 = vtanh.f32 %v1038_v31  ;;  %v2466_v28 = vpop.eup %2465  ;;  %1287 = vmatpush.msrb.mxu1 %v2464_v42  ;;  %v4497_v42 = vld [vmem:[#allocation18_spill] sm:$0xff] }
 0x1ed   : > { %2477 = vtanh.f32 %v970_v27  ;;  %v2468_v48 = vpop.eup %2467  ;;  %1223 = vmatpush.msrb.mxu0 %v2466_v28  ;;  %v4498_v28 = vld [vmem:[#allocation19_spill] sm:$0xff] }
 0x1ee   : > { %2479 = vtanh.f32 %v1035_v62  ;;  %1288 = vmatpush.msrb.mxu1 %v2468_v48  ;;  %v4499_v48 = vld [vmem:[#allocation16_spill] sm:$0xff] }
 0x1ef   : > { %v2470_v18 = vpop.eup %2469  ;;  %2481 = vtanh.f32 %v967_v54  ;;  %1224 = vmatpush.msrb.mxu0 %v2454_v29 }
 0x1f0   : > { %v2472_v31 = vpop.eup %2471  ;;  %2483 = vtanh.f32 %v1032_v49  ;;  %1351 = vmatpush.msrb.mxu2 %v2470_v18  ;;  %1289 = vmatpush.msrb.mxu1 %v2456_v58  ;;  %v4493_v58 = vld [vmem:[#allocation11_spill] sm:$0xff]  ;;  %v4500_v18 = vld [vmem:[#allocation17_spill] sm:$0xff] }
 0x1f1   : > { %v2474_v20 = vpop.eup %2473  ;;  %2485 = vtanh.f32 %v964_v36  ;;  %1416 = vmatpush.msrb.mxu3 %v2472_v31  ;;  %1225 = vmatpush.msrb.mxu0 %v2450_v8  ;;  %v4490_v8 = vld [vmem:[#allocation23_spill] sm:$0xff]  ;;  %v931_v27 = vadd.f32 %v4494_v32, %v4493_v58  ;;  %v996_v54 = vadd.f32 %v4496_v17, %v4493_v58  ;;  %v3786_v17 = vpop.permute.xlu2 %1208 }
 0x1f2   : > { %v2476_v23 = vpop.eup %2475  ;;  %2487 = vtanh.f32 %v1029_v53  ;;  %1352 = vmatpush.msrb.mxu2 %v2474_v20  ;;  %1290 = vmatpush.msrb.mxu1 %v2452_v21 }
 0x1f3   : > { %v2478_v12 = vpop.eup %2477  ;;  %2489 = vtanh.f32 %v961_v14  ;;  %1417 = vmatpush.msrb.mxu3 %v2476_v23  ;;  %1226 = vmatpush.msrb.mxu0 %v3588_v41  ;;  %v1014_v41 = vadd.f32 %v3413_v52, %v3441_v1  ;;  %v943_v1 = vadd.f32 %v3387_v38, %v3457_v0  ;;  %v2164_v14 = vld [vmem:[%s4436_s3 + $0x80] sm:$0xff] }
 0x1f4   : > { %v2480_v13 = vpop.eup %2479  ;;  %2491 = vtanh.f32 %v1026_v47  ;;  %1353 = vmatpush.msrb.mxu2 %v2478_v12  ;;  %1291 = vmatpush.msrb.mxu1 %v3592_v63  ;;  %v4487_v63 = vld [vmem:[#allocation22_spill] sm:$0xff] }
 0x1f5   : > { %v2482_v29 = vpop.eup %2481  ;;  %2493 = vtanh.f32 %v958_v19  ;;  %1418 = vmatpush.msrb.mxu3 %v2480_v13  ;;  %1227 = vmatpush.msrb.mxu0 %v3582_v25  ;;  %v1011_v25 = vadd.f32 %v3399_v44, %v3459_v11  ;;  %v940_v11 = vadd.f32 %v3379_v34, %v3455_v10  ;;  %v4501_v47 = vld [vmem:[#allocation14_spill] sm:$0xff]  ;;  %v4502_v19 = vld [vmem:[#allocation15_spill] sm:$0xff] }
 0x1f6   : > { %v2484_v60 = vpop.eup %2483  ;;  %2495 = vtanh.f32 %v1023_v59  ;;  %1354 = vmatpush.msrb.mxu2 %v2482_v29  ;;  %1292 = vmatpush.msrb.mxu1 %v3585_v26  ;;  %v2166_v29 = vld [vmem:[%s4436_s3 + $0x90] sm:$0xff] }
 0x1f7   : > { %v2486_v61 = vpop.eup %2485  ;;  %2497 = vtanh.f32 %v955_v56  ;;  %1419 = vmatpush.msrb.mxu3 %v2484_v60  ;;  %1228 = vmatpush.msrb.mxu0 %v3576_v24  ;;  %v1008_v24 = vadd.f32 %v3389_v39, %v3457_v0  ;;  %v4483_v0 = vld [vmem:[#allocation13_spill] sm:$0xff]  ;;  %v2168_v60 = vld [vmem:[%s4436_s3 + $0xa0] sm:$0xff] }
 0x1f8   : > { %v2488_v57 = vpop.eup %2487  ;;  %2499 = vtanh.f32 %v1020_v6  ;;  %1355 = vmatpush.msrb.mxu2 %v2486_v61  ;;  %1293 = vmatpush.msrb.mxu1 %v3578_v15  ;;  %v4485_v15 = vld [vmem:[#allocation24_spill] sm:$0xff]  ;;  %v2170_v61 = vld [vmem:[%s4436_s3 + $0xb0] sm:$0xff] }
 0x1f9   : > { %v2490_v51 = vpop.eup %2489  ;;  %2501 = vtanh.f32 %v952_v55  ;;  %1420 = vmatpush.msrb.mxu3 %v2488_v57  ;;  %1229 = vmatpush.msrb.mxu0 %v3568_v45  ;;  %v1005_v45 = vadd.f32 %v3381_v35, %v3455_v10  ;;  %v4488_v10 = vld [vmem:[#allocation12_spill] sm:$0xff]  ;;  %v2167_v55 = vld [vmem:[%s4436_s3 + $0x98] sm:$0xff]  ;;  %v2172_v57 = vld [vmem:[%s4436_s3 + $0xc0] sm:$0xff] }
 0x1fa   : > { %v2492_v50 = vpop.eup %2491  ;;  %2503 = vtanh.f32 %v1017_v7  ;;  %1356 = vmatpush.msrb.mxu2 %v2490_v51  ;;  %1294 = vmatpush.msrb.mxu1 %v3572_v46  ;;  %v999_v9 = vadd.f32 %v4491_v37, %v4488_v10  ;;  %v2165_v6 = vld [vmem:[%s4436_s3 + $0x88] sm:$0xff]  ;;  %v2174_v51 = vld [vmem:[%s4436_s3 + $0xd0] sm:$0xff] }
 0x1fb   : > { %v2494_v52 = vpop.eup %2493  ;;  %2505 = vtanh.f32 %v949_v5  ;;  %1421 = vmatpush.msrb.mxu3 %v2492_v50  ;;  %1230 = vmatpush.msrb.mxu0 %v3560_v16  ;;  %v4484_v16 = vld [vmem:[#allocation9_spill] sm:$0xff]  ;;  %v2169_v7 = vld [vmem:[%s4436_s3 + $0xa8] sm:$0xff]  ;;  %v2171_v5 = vld [vmem:[%s4436_s3 + $0xb8] sm:$0xff] }
 0x1fc   : > { %v2496_v43 = vpop.eup %2495  ;;  %2507 = vtanh.f32 %v1014_v41  ;;  %1357 = vmatpush.msrb.mxu2 %v2494_v52  ;;  %1295 = vmatpush.msrb.mxu1 %v3564_v33  ;;  %v937_v46 = vadd.f32 %v4484_v16, %v4483_v0  ;;  %v4486_v33 = vld [vmem:[#allocation10_spill] sm:$0xff]  ;;  %v2173_v41 = vld [vmem:[%s4436_s3 + $0xc8] sm:$0xff]  ;;  %v2176_v50 = vld [vmem:[%s4436_s3 + $0xe0] sm:$0xff] }
 0x1fd   : > { %v2498_v44 = vpop.eup %2497  ;;  %2509 = vtanh.f32 %v946_v2  ;;  %1422 = vmatpush.msrb.mxu3 %v2496_v43  ;;  %1231 = vmatpush.msrb.mxu0 %v3552_v40  ;;  %v1002_v26 = vadd.f32 %v4486_v33, %v4483_v0  ;;  %v4489_v40 = vld [vmem:[#allocation7_spill] sm:$0xff]  ;;  %v2175_v2 = vld [vmem:[%s4436_s3 + $0xd8] sm:$0xff]  ;;  %v2178_v52 = vld [vmem:[%s4436_s3 + $0xf0] sm:$0xff] }
 0x1fe   : > { %v2500_v38 = vpop.eup %2499  ;;  %2511 = vtanh.f32 %v1011_v25  ;;  %1358 = vmatpush.msrb.mxu2 %v2498_v44  ;;  %1296 = vmatpush.msrb.mxu1 %v4485_v15  ;;  %v934_v3 = vadd.f32 %v4489_v40, %v4488_v10  ;;  %v2177_v25 = vld [vmem:[%s4436_s3 + $0xe8] sm:$0xff] }
 0x1ff   : > { %v2502_v39 = vpop.eup %2501  ;;  %2513 = vtanh.f32 %v943_v1  ;;  %1423 = vmatpush.msrb.mxu3 %v2500_v38  ;;  %1232 = vmatpush.msrb.mxu0 %v4487_v63  ;;  %v2179_v1 = vld [vmem:[%s4436_s3 + $0xf8] sm:$0xff] }
 0x200   : > { %v2504_v34 = vpop.eup %2503  ;;  %2515 = vtanh.f32 %v1008_v24  ;;  %1359 = vmatpush.msrb.mxu2 %v2502_v39  ;;  %1297 = vmatpush.msrb.mxu1 %v4490_v8 }
 0x201   : > { %v2506_v35 = vpop.eup %2505  ;;  %2517 = vtanh.f32 %v940_v11  ;;  %1424 = vmatpush.msrb.mxu3 %v2504_v34  ;;  %1233 = vmatpush.msrb.mxu0 %v4492_v22 }
 0x202   : > { %v2508_v21 = vpop.eup %2507  ;;  %2519 = vtanh.f32 %v1005_v45  ;;  %1360 = vmatpush.msrb.mxu2 %v2506_v35  ;;  %1298 = vmatpush.msrb.mxu1 %v4495_v4 }
 0x203   : > { %v2510_v30 = vpop.eup %2509  ;;  %2521 = vtanh.f32 %v937_v46  ;;  %1425 = vmatpush.msrb.mxu3 %v2508_v21  ;;  %1234 = vmatpush.msrb.mxu0 %v4497_v42 }
 0x204   : > { %v2512_v62 = vpop.eup %2511  ;;  %2523 = vtanh.f32 %v1002_v26  ;;  %1361 = vmatpush.msrb.mxu2 %v2510_v30  ;;  %1299 = vmatpush.msrb.mxu1 %v4498_v28 }
 0x205   : > { %v2514_v49 = vpop.eup %2513  ;;  %2525 = vtanh.f32 %v934_v3  ;;  %1426 = vmatpush.msrb.mxu3 %v2512_v62  ;;  %1235 = vmatpush.msrb.mxu0 %v4499_v48 }
 0x206   : > { %v2516_v36 = vpop.eup %2515  ;;  %2527 = vtanh.f32 %v999_v9  ;;  %1362 = vmatpush.msrb.mxu2 %v2514_v49  ;;  %1300 = vmatpush.msrb.mxu1 %v4500_v18  ;;  %v3770_v9 = vpop.permute.xlu0 %1218 }
 0x207   : > { %v2518_v53 = vpop.eup %2517  ;;  %2529 = vtanh.f32 %v931_v27  ;;  %1427 = vmatpush.msrb.mxu3 %v2516_v36  ;;  %1236 = vmatpush.msrb.mxu0 %v4501_v47  ;;  %v3792_v49 = vpop.permute.xlu1 %1213 }
 0x208   : > { %v2520_v31 = vpop.eup %2519  ;;  %2531 = vtanh.f32 %v996_v54  ;;  %1363 = vmatpush.msrb.mxu2 %v2518_v53  ;;  %1301 = vmatpush.msrb.mxu1 %v4502_v19 }
 0x209   : > { %v2522_v20 = vpop.eup %2521  ;;  %1428 = vmatpush.msrb.mxu3 %v2520_v31  ;;  %1237 = vmatmul.f32.vlgmr.msrb.gmra.mxu0 %v2164_v14 }
 0x20a   : > { %v2524_v23 = vpop.eup %2523  ;;  %1302 = vmatmul.f32.vlgmr.msrb.gmra.mxu1 %v2164_v14  ;;  %1364 = vmatpush.msrb.mxu2 %v2522_v20 }
 0x20b   : > { %v2526_v59 = vpop.eup %2525  ;;  %1429 = vmatpush.msrb.mxu3 %v2524_v23 }
 0x20c   : > { %v2528_v12 = vpop.eup %2527  ;;  %1365 = vmatpush.msrb.mxu2 %v2526_v59 }
 0x20d   : > { %v2530_v56 = vpop.eup %2529  ;;  %1430 = vmatpush.msrb.mxu3 %v2528_v12 }
 0x20e   : > { %v2532_v13 = vpop.eup %2531  ;;  %1366 = vmatpush.msrb.mxu2 %v2530_v56  ;;  %v3784_v62 = vpop.permute.xlu0 %1203 }
 0x20f   : > { %1431 = vmatpush.msrb.mxu3 %v2532_v13  ;;  %1367 = vmatmul.f32.vlgmr.msrb.gmra.mxu2 %v2164_v14  ;;  %v3806_v31 = vpop.permute.xlu1 %1198 }
 0x210   : > { %1432 = vmatmul.f32.vlgmr.msrb.gmra.mxu3 %v2164_v14  ;;  %v3804_v14 = vpop.permute.xlu2 %1193 }
 0x211   : > { %1240 = vmatmul.f32.gmra.mxu0 %v2165_v6 }
 0x212   : > { %1305 = vmatmul.f32.gmra.mxu1 %v2165_v6 }
 0x216   : > { %v3798_v48 = vpop.permute.xlu0 %1188 }
 0x217   : > { %1370 = vmatmul.f32.gmra.mxu2 %v2165_v6 }
 0x218   : > { %1435 = vmatmul.f32.gmra.mxu3 %v2165_v6  ;;  %v3818_v12 = vpop.permute.xlu2 %1178  ;;  %v3824_v6 = vpop.permute.xlu1 %1183 }
 0x219   : > { %1243 = vmatmul.f32.gmra.mxu0 %v2166_v29 }
 0x21a   : > { %1308 = vmatmul.f32.gmra.mxu1 %v2166_v29 }
 0x21e   : > { %v3816_v59 = vpop.permute.xlu0 %1173 }
 0x21f   : > { %1373 = vmatmul.f32.gmra.mxu2 %v2166_v29 }
 0x220   : > { %1438 = vmatmul.f32.gmra.mxu3 %v2166_v29 }
 0x221   : > { %1246 = vmatmul.f32.gmra.mxu0 %v2167_v55 }
 0x222   : > { %1311 = vmatmul.f32.gmra.mxu1 %v2167_v55 }
 0x227   : > { %1376 = vmatmul.f32.gmra.mxu2 %v2167_v55 }
 0x228   : > { %1441 = vmatmul.f32.gmra.mxu3 %v2167_v55 }
 0x229   : > { %1249 = vmatmul.f32.gmra.mxu0 %v2168_v60 }
 0x22a   : > { %1314 = vmatmul.f32.gmra.mxu1 %v2168_v60 }
 0x22f   : > { %1379 = vmatmul.f32.gmra.mxu2 %v2168_v60 }
 0x230   : > { %1444 = vmatmul.f32.gmra.mxu3 %v2168_v60  ;;  %v3830_v60 = vpop.permute.xlu0 %1158 }
 0x231   : > { %1252 = vmatmul.f32.gmra.mxu0 %v2169_v7 }
 0x232   : > { %1317 = vmatmul.f32.gmra.mxu1 %v2169_v7 }
 0x237   : > { %1382 = vmatmul.f32.gmra.mxu2 %v2169_v7 }
 0x238   : > { %1447 = vmatmul.f32.gmra.mxu3 %v2169_v7 }
 0x239   : > { %1255 = vmatmul.f32.gmra.mxu0 %v2170_v61 }
 0x23a   : > { %1320 = vmatmul.f32.gmra.mxu1 %v2170_v61 }
 0x23f   : > { %1385 = vmatmul.f32.gmra.mxu2 %v2170_v61 }
 0x240   : > { %1450 = vmatmul.f32.gmra.mxu3 %v2170_v61 }
 0x241   : > { %1258 = vmatmul.f32.gmra.mxu0 %v2171_v5 }
 0x242   : > { %1323 = vmatmul.f32.gmra.mxu1 %v2171_v5 }
 0x247   : > { %1388 = vmatmul.f32.gmra.mxu2 %v2171_v5 }
 0x248   : > { %1453 = vmatmul.f32.gmra.mxu3 %v2171_v5  ;;  %v3836_v5 = vpop.permute.xlu2 %1163 }
 0x249   : > { %1261 = vmatmul.f32.gmra.mxu0 %v2172_v57 }
 0x24a   : > { %1326 = vmatmul.f32.gmra.mxu1 %v2172_v57 }
 0x24f   : > { %1391 = vmatmul.f32.gmra.mxu2 %v2172_v57 }
 0x250   : > { %1456 = vmatmul.f32.gmra.mxu3 %v2172_v57  ;;  %v3838_v57 = vpop.permute.xlu1 %1168 }
 0x251   : > { %1264 = vmatmul.f32.gmra.mxu0 %v2173_v41 }
 0x252   : > { %1329 = vmatmul.f32.gmra.mxu1 %v2173_v41 }
 0x257   : > { %1394 = vmatmul.f32.gmra.mxu2 %v2173_v41 }
 0x258   : > { %1459 = vmatmul.f32.gmra.mxu3 %v2173_v41 }
 0x259   : > { %1267 = vmatmul.f32.gmra.mxu0 %v2174_v51 }
 0x25a   : > { %1332 = vmatmul.f32.gmra.mxu1 %v2174_v51 }
 0x25f   : > { %1397 = vmatmul.f32.gmra.mxu2 %v2174_v51 }
 0x260   : > { %1462 = vmatmul.f32.gmra.mxu3 %v2174_v51 }
 0x261   : > { %1270 = vmatmul.f32.gmra.mxu0 %v2175_v2 }
 0x262   : > { %1335 = vmatmul.f32.gmra.mxu1 %v2175_v2 }
 0x267   : > { %1400 = vmatmul.f32.gmra.mxu2 %v2175_v2 }
 0x268   : > { %1465 = vmatmul.f32.gmra.mxu3 %v2175_v2 }
 0x269   : > { %1273 = vmatmul.f32.gmra.mxu0 %v2176_v50 }
 0x26a   : > { %1338 = vmatmul.f32.gmra.mxu1 %v2176_v50 }
 0x26f   : > { %1403 = vmatmul.f32.gmra.mxu2 %v2176_v50 }
 0x270   : > { %1468 = vmatmul.f32.gmra.mxu3 %v2176_v50 }
 0x271   : > { %1276 = vmatmul.f32.gmra.mxu0 %v2177_v25 }
 0x272   : > { %1341 = vmatmul.f32.gmra.mxu1 %v2177_v25 }
 0x277   : > { %1406 = vmatmul.f32.gmra.mxu2 %v2177_v25 }
 0x278   : > { %1471 = vmatmul.f32.gmra.mxu3 %v2177_v25  ;;  %v3848_v25 = vpop.permute.xlu0 %1143 }
 0x279   : > { %1279 = vmatmul.f32.gmra.mxu0 %v2178_v52  ;;  %4511 = vst [vmem:[#allocation8_spill] sm:$0xff] %v3848_v25 }
 0x27a   : > { %1344 = vmatmul.f32.gmra.mxu1 %v2178_v52 }
 0x27f   : > { %1409 = vmatmul.f32.gmra.mxu2 %v2178_v52 }
 0x280   : > { %1474 = vmatmul.f32.gmra.mxu3 %v2178_v52  ;;  %v3850_v52 = vpop.permute.xlu2 %1148 }
 0x281   : > { %1282 = vmatmul.f32.gmra.mxu0 %v2179_v1  ;;  %4512 = vst [vmem:[#allocation20_spill] sm:$0xff] %v3850_v52 }
 0x282   : > { %1347 = vmatmul.f32.gmra.mxu1 %v2179_v1 }
 0x286   : > { %v3726_v43 = vpop.f32.mrf.mxu0 }
 0x287   : > { %v3728_v24 = vpop.f32.mrf.mxu1  ;;  %1412 = vmatmul.f32.gmra.mxu2 %v2179_v1 }
 0x288   : > { %1477 = vmatmul.f32.gmra.mxu3 %v2179_v1  ;;  %v1239_v1 = vadd.f32 %v3726_v43, %v3848_v25 }
 0x28a   : > { %2533 = vtanh.f32 %v1239_v1 }
 0x28e   : > { %v3730_v44 = vpop.f32.mrf.mxu0 }
 0x28f   : > { %v3732_v11 = vpop.f32.mrf.mxu1 }
 0x292   : > { %v3734_v38 = vpop.f32.mrf.mxu2 }
 0x293   : > { %4503 = vst [vmem:[#allocation13_spill] sm:$0xff] %v3734_v38  ;;  %v3736_v45 = vpop.f32.mrf.mxu3 }
 0x294   : > { %4504 = vst [vmem:[#allocation9_spill] sm:$0xff] %v3736_v45  ;;  %v1304_v45 = vadd.f32 %v3728_v24, %v3848_v25 }
 0x296   : > { %v3738_v39 = vpop.f32.mrf.mxu0  ;;  %2535 = vtanh.f32 %v1304_v45 }
 0x297   : > { %v3740_v0 = vpop.f32.mrf.mxu1 }
 0x29a   : > { %v3742_v16 = vpop.f32.mrf.mxu2 }
 0x29b   : > { %4505 = vst [vmem:[#allocation24_spill] sm:$0xff] %v3742_v16  ;;  %v3744_v46 = vpop.f32.mrf.mxu3  ;;  %v1242_v16 = vadd.f32 %v3730_v44, %v3850_v52 }
 0x29c   : > { %4506 = vst [vmem:[#allocation10_spill] sm:$0xff] %v3744_v46 }
 0x29d   : > { %2537 = vtanh.f32 %v1242_v16  ;;  %v3884_v16 = vpop.eup %2533 }
 0x29e   : > { %v3746_v15 = vpop.f32.mrf.mxu0  ;;  %4514 = vst [vmem:[#allocation5_spill] sm:$0xff] %v3884_v16 }
 0x29f   : > { %v3748_v34 = vpop.f32.mrf.mxu1  ;;  %v1248_v44 = vadd.f32 %v3746_v15, %v3830_v60 }
 0x2a2   : > { %v3750_v33 = vpop.f32.mrf.mxu2 }
 0x2a3   : > { %4507 = vst [vmem:[#allocation22_spill] sm:$0xff] %v3750_v33  ;;  %v3752_v26 = vpop.f32.mrf.mxu3  ;;  %v1307_v33 = vadd.f32 %v3732_v11, %v3850_v52 }
 0x2a4   : > { %4508 = vst [vmem:[#allocation12_spill] sm:$0xff] %v3752_v26  ;;  %v3862_v26 = vpop.permute.xlu1 %1153 }
 0x2a5   : > { %4513 = vst [vmem:[#allocation11_spill] sm:$0xff] %v3862_v26  ;;  %v1310_v43 = vadd.f32 %v3740_v0, %v3862_v26  ;;  %2539 = vtanh.f32 %v1307_v33  ;;  %v3888_v33 = vpop.eup %2535 }
 0x2a6   : > { %v3754_v63 = vpop.f32.mrf.mxu0  ;;  %4515 = vst [vmem:[#allocation21_spill] sm:$0xff] %v3888_v33 }
 0x2a7   : > { %v3756_v35 = vpop.f32.mrf.mxu1  ;;  %v1251_v11 = vadd.f32 %v3754_v63, %v3836_v5  ;;  %v3892_v63 = vpop.eup %2537 }
 0x2a8   : > { %v1316_v45 = vadd.f32 %v3756_v35, %v3836_v5  ;;  %4516 = vst [vmem:[#allocation6_spill] sm:$0xff] %v3892_v63 }
 0x2aa   : > { %v3758_v10 = vpop.f32.mrf.mxu2 }
 0x2ab   : > { %4509 = vst [vmem:[#allocation7_spill] sm:$0xff] %v3758_v10  ;;  %v3760_v40 = vpop.f32.mrf.mxu3  ;;  %v1313_v10 = vadd.f32 %v3748_v34, %v3830_v60 }
 0x2ac   : > { %4510 = vst [vmem:[#allocation23_spill] sm:$0xff] %v3760_v40  ;;  %v1245_v40 = vadd.f32 %v3738_v39, %v3862_v26 }
 0x2ae   : > { %v3762_v3 = vpop.f32.mrf.mxu0  ;;  %2541 = vtanh.f32 %v1245_v40  ;;  %v3896_v40 = vpop.eup %2539 }
 0x2af   : > { %v3764_v8 = vpop.f32.mrf.mxu1  ;;  %2543 = vtanh.f32 %v1310_v43  ;;  %v1254_v15 = vadd.f32 %v3762_v3, %v3838_v57  ;;  %4517 = vst [vmem:[#allocation18_spill] sm:$0xff] %v3896_v40 }
 0x2b0   : > { %2545 = vtanh.f32 %v1248_v44  ;;  %v1319_v34 = vadd.f32 %v3764_v8, %v3838_v57 }
 0x2b1   : > { %2547 = vtanh.f32 %v1313_v10 }
 0x2b2   : > { %v3766_v21 = vpop.f32.mrf.mxu2  ;;  %2549 = vtanh.f32 %v1251_v11 }
 0x2b3   : > { %v3768_v37 = vpop.f32.mrf.mxu3  ;;  %2551 = vtanh.f32 %v1316_v45 }
 0x2b4   : > { %v3900_v44 = vpop.eup %2541  ;;  %2553 = vtanh.f32 %v1254_v15 }
 0x2b5   : > { %4518 = vst [vmem:[#allocation19_spill] sm:$0xff] %v3900_v44  ;;  %v3904_v8 = vpop.eup %2543  ;;  %2555 = vtanh.f32 %v1319_v34 }
 0x2b6   : > { %v3772_v22 = vpop.f32.mrf.mxu0  ;;  %4519 = vst [vmem:[#allocation16_spill] sm:$0xff] %v3904_v8  ;;  %v3908_v11 = vpop.eup %2545 }
 0x2b7   : > { %v3774_v30 = vpop.f32.mrf.mxu1  ;;  %v1257_v35 = vadd.f32 %v3772_v22, %v3816_v59  ;;  %v3912_v45 = vpop.eup %2547 }
 0x2b8   : > { %v1322_v1 = vadd.f32 %v3774_v30, %v3816_v59  ;;  %4520 = vst [vmem:[#allocation17_spill] sm:$0xff] %v3912_v45  ;;  %v3920_v34 = vpop.eup %2549 }
 0x2b9   : > { %2557 = vtanh.f32 %v1257_v35  ;;  %v3924_v35 = vpop.eup %2551 }
 0x2ba   : > { %v3776_v58 = vpop.f32.mrf.mxu2  ;;  %2559 = vtanh.f32 %v1322_v1  ;;  %v3928_v1 = vpop.eup %2553 }
 0x2bb   : > { %v3778_v32 = vpop.f32.mrf.mxu3 }
 0x2be   : > { %v3780_v27 = vpop.f32.mrf.mxu0 }
 0x2bf   : > { %v3782_v4 = vpop.f32.mrf.mxu1  ;;  %v1260_v10 = vadd.f32 %v3780_v27, %v3818_v12 }
 0x2c0   : > { %v1325_v22 = vadd.f32 %v3782_v4, %v3818_v12 }
 0x2c1   : > { %2561 = vtanh.f32 %v1260_v10 }
 0x2c2   : > { %v3788_v54 = vpop.f32.mrf.mxu2  ;;  %2563 = vtanh.f32 %v1325_v22 }
 0x2c3   : > { %v3790_v42 = vpop.f32.mrf.mxu3 }
 0x2c6   : > { %v3794_v28 = vpop.f32.mrf.mxu0 }
 0x2c7   : > { %v3796_v36 = vpop.f32.mrf.mxu1  ;;  %v1263_v30 = vadd.f32 %v3794_v28, %v3824_v6 }
 0x2c8   : > { %v1328_v15 = vadd.f32 %v3796_v36, %v3824_v6  ;;  %v3930_v36 = vpop.eup %2555 }
 0x2c9   : > { %2565 = vtanh.f32 %v1263_v30  ;;  %v3932_v52 = vpop.eup %2557 }
 0x2ca   : > { %v3800_v53 = vpop.f32.mrf.mxu2  ;;  %2567 = vtanh.f32 %v1328_v15  ;;  %v3937_v63 = vpop.eup %2559 }
 0x2cb   : > { %v3802_v18 = vpop.f32.mrf.mxu3  ;;  %v3940_v30 = vpop.eup %2561 }
 0x2cc   : > { %v3943_v8 = vpop.eup %2563 }
 0x2ce   : > { %v3808_v47 = vpop.f32.mrf.mxu0 }
 0x2cf   : > { %v3810_v20 = vpop.f32.mrf.mxu1  ;;  %v1266_v4 = vadd.f32 %v3808_v47, %v3798_v48  ;;  %v3947_v26 = vpop.eup %2565 }
 0x2d0   : > { %v1331_v28 = vadd.f32 %v3810_v20, %v3798_v48 }
 0x2d1   : > { %2569 = vtanh.f32 %v1266_v4 }
 0x2d2   : > { %v3812_v19 = vpop.f32.mrf.mxu2  ;;  %2571 = vtanh.f32 %v1331_v28 }
 0x2d3   : > { %v3814_v23 = vpop.f32.mrf.mxu3 }
 0x2d6   : > { %v3820_v56 = vpop.f32.mrf.mxu0 }
 0x2d7   : > { %v3822_v13 = vpop.f32.mrf.mxu1 }
 0x2da   : > { %v3826_v29 = vpop.f32.mrf.mxu2 }
 0x2db   : > { %v3828_v55 = vpop.f32.mrf.mxu3 }
 0x2de   : > { %v3832_v7 = vpop.f32.mrf.mxu0 }
 0x2df   : > { %v3834_v61 = vpop.f32.mrf.mxu1 }
 0x2e2   : > { %v3840_v41 = vpop.f32.mrf.mxu2 }
 0x2e3   : > { %v3842_v51 = vpop.f32.mrf.mxu3 }
 0x2e6   : > { %v3844_v2 = vpop.f32.mrf.mxu0 }
 0x2e7   : > { %v3846_v50 = vpop.f32.mrf.mxu1 }
 0x2ea   : > { %v3856_v38 = vpop.f32.mrf.mxu2 }
 0x2eb   : > { %v3858_v46 = vpop.f32.mrf.mxu3 }
 0x2ee   : > { %v1277_v24 = vpop.f32.mrf.mxu0 }
 0x2ef   : > { %v3870_v25 = vpop.f32.mrf.mxu1  ;;  %v1278_v15 = vadd.f32 %v1277_v24, %v3786_v17  ;;  %v1340_v24 = vadd.f32 %v3846_v50, %v3784_v62  ;;  %v1334_v50 = vadd.f32 %v3822_v13, %v3804_v14 }
 0x2f0   : > { %v1343_v4 = vadd.f32 %v3870_v25, %v3786_v17 }
 0x2f2   : > { %v3880_v39 = vpop.f32.mrf.mxu2 }
 0x2f3   : > { %v3882_v0 = vpop.f32.mrf.mxu3 }
 0x2f6   : > { %v1280_v43 = vpop.f32.mrf.mxu0 }
 0x2f7   : > { %v1345_v3 = vpop.f32.mrf.mxu1  ;;  %v1281_v10 = vadd.f32 %v1280_v43, %v3792_v49 }
 0x2f8   : > { %v1346_v20 = vadd.f32 %v1345_v3, %v3792_v49  ;;  %v3951_v3 = vpop.eup %2567 }
 0x2f9   : > { %v2570_v28 = vpop.eup %2569 }
 0x2fa   : > { %v3916_v33 = vpop.f32.mrf.mxu2  ;;  %v3957_v25 = vpop.eup %2571 }
 0x2fb   : > { %v3918_v27 = vpop.f32.mrf.mxu3 }
 0x2fe   : > { %v1283_v16 = vpop.f32.mrf.mxu0 }
 0x2ff   : > { %v1348_v40 = vpop.f32.mrf.mxu1  ;;  %v1284_v47 = vadd.f32 %v1283_v16, %v3770_v9 }
 0x300   : > { %v1349_v22 = vadd.f32 %v1348_v40, %v3770_v9  ;;  %v1275_v40 = vadd.f32 %v3844_v2, %v3784_v62  ;;  %v1269_v2 = vadd.f32 %v3820_v56, %v3804_v14 }
 0x301   : > { %2573 = vtanh.f32 %v1284_v47  ;;  %v1272_v47 = vadd.f32 %v3832_v7, %v3806_v31 }
 0x302   : > { %2575 = vtanh.f32 %v1349_v22  ;;  %v1410_v43 = vpop.f32.mrf.mxu2  ;;  %v1337_v22 = vadd.f32 %v3834_v61, %v3806_v31 }
 0x303   : > { %v1475_v16 = vpop.f32.mrf.mxu3  ;;  %2577 = vtanh.f32 %v1281_v10 }
 0x304   : > { %2579 = vtanh.f32 %v1346_v20 }
 0x305   : > { %2581 = vtanh.f32 %v1278_v15 }
 0x306   : > { %2583 = vtanh.f32 %v1343_v4  ;;  %v1411_v4 = vadd.f32 %v1410_v43, %v3792_v49  ;;  %v1473_v43 = vadd.f32 %v3918_v27, %v3786_v17  ;;  %v1467_v27 = vadd.f32 %v3858_v46, %v3806_v31 }
 0x307   : > { %v2574_v44 = vpop.eup %2573  ;;  %2585 = vtanh.f32 %v1275_v40 }
 0x308   : > { %v2576_v10 = vpop.eup %2575  ;;  %2587 = vtanh.f32 %v1340_v24  ;;  %1659 = vmatpush.msra.mxu0 %v2574_v44  ;;  %v1476_v44 = vadd.f32 %v1475_v16, %v3792_v49  ;;  %v1402_v16 = vadd.f32 %v3856_v38, %v3806_v31  ;;  %v1461_v31 = vadd.f32 %v3828_v55, %v3798_v48 }
 0x309   : > { %v2578_v20 = vpop.eup %2577  ;;  %2589 = vtanh.f32 %v1272_v47  ;;  %1724 = vmatpush.msra.mxu1 %v2576_v10  ;;  %v1408_v47 = vadd.f32 %v3916_v33, %v3786_v17  ;;  %v1399_v10 = vadd.f32 %v3840_v41, %v3804_v14  ;;  %v1393_v41 = vadd.f32 %v3812_v19, %v3824_v6 }
 0x30a   : > { %v2580_v7 = vpop.eup %2579  ;;  %2591 = vtanh.f32 %v1337_v22  ;;  %v1413_v15 = vpop.f32.mrf.mxu2  ;;  %1660 = vmatpush.msra.mxu0 %v2578_v20  ;;  %v1455_v55 = vadd.f32 %v3802_v18, %v3818_v12  ;;  %v4528_v20 = vld [vmem:[#allocation12_spill] sm:$0xff] }
 0x30b   : > { %v1478_v45 = vpop.f32.mrf.mxu3  ;;  %v2582_v61 = vpop.eup %2581  ;;  %2593 = vtanh.f32 %v1269_v2  ;;  %v1414_v56 = vadd.f32 %v1413_v15, %v3770_v9  ;;  %1725 = vmatpush.msra.mxu1 %v2580_v7  ;;  %v4529_v15 = vld [vmem:[#allocation6_spill] sm:$0xff] }
 0x30c   : > { %v1479_v40 = vadd.f32 %v1478_v45, %v3770_v9  ;;  %v2584_v13 = vpop.eup %2583  ;;  %2595 = vtanh.f32 %v1334_v50  ;;  %1661 = vmatpush.msra.mxu0 %v2582_v61  ;;  %v1405_v9 = vadd.f32 %v3880_v39, %v3784_v62  ;;  %v1470_v45 = vadd.f32 %v3882_v0, %v3784_v62  ;;  %v4530_v61 = vld [vmem:[#allocation20_spill] sm:$0xff] }
 0x30d   : > { %v2586_v24 = vpop.eup %2585  ;;  %2597 = vtanh.f32 %v1414_v56  ;;  %1726 = vmatpush.msra.mxu1 %v2584_v13  ;;  %v1464_v0 = vadd.f32 %v3842_v51, %v3804_v14  ;;  %v1396_v50 = vadd.f32 %v3826_v29, %v3798_v48  ;;  %v1458_v51 = vadd.f32 %v3814_v23, %v3824_v6  ;;  %v2196_v13 = vld [vmem:[%s4436_s3 + $0x100] sm:$0xff] }
 0x30e   : > { %v2588_v22 = vpop.eup %2587  ;;  %2599 = vtanh.f32 %v1479_v40  ;;  %1662 = vmatpush.msra.mxu0 %v2586_v24  ;;  %v1387_v6 = vadd.f32 %v3788_v54, %v3816_v59  ;;  %v4532_v40 = vld [vmem:[#allocation18_spill] sm:$0xff] }
 0x30f   : > { %v2590_v2 = vpop.eup %2589  ;;  %2601 = vtanh.f32 %v1411_v4  ;;  %1727 = vmatpush.msra.mxu1 %v2588_v22  ;;  %v4531_v4 = vld [vmem:[#allocation24_spill] sm:$0xff]  ;;  %v4533_v24 = vld [vmem:[#allocation10_spill] sm:$0xff]  ;;  %v4534_v22 = vld [vmem:[#allocation5_spill] sm:$0xff] }
 0x310   : > { %v2592_v49 = vpop.eup %2591  ;;  %2603 = vtanh.f32 %v1476_v44  ;;  %1663 = vmatpush.msra.mxu0 %v2590_v2  ;;  %v1372_v56 = vadd.f32 %v4531_v4, %v4530_v61  ;;  %v4535_v2 = vld [vmem:[#allocation8_spill] sm:$0xff] }
 0x311   : > { %v2594_v33 = vpop.eup %2593  ;;  %2605 = vtanh.f32 %v1408_v47  ;;  %1728 = vmatpush.msra.mxu1 %v2592_v49  ;;  %v1437_v47 = vadd.f32 %v4533_v24, %v4530_v61 }
 0x312   : > { %v2596_v17 = vpop.eup %2595  ;;  %2607 = vtanh.f32 %v1473_v43  ;;  %1664 = vmatpush.msra.mxu0 %v2594_v33 }
 0x313   : > { %v2598_v39 = vpop.eup %2597  ;;  %2609 = vtanh.f32 %v1405_v9  ;;  %1729 = vmatpush.msra.mxu1 %v2596_v17  ;;  %v4536_v9 = vld [vmem:[#allocation13_spill] sm:$0xff] }
 0x314   : > { %v2600_v62 = vpop.eup %2599  ;;  %2611 = vtanh.f32 %v1470_v45  ;;  %1665 = vmatpush.msra.mxu0 %v2570_v28  ;;  %1789 = vmatpush.msra.mxu2 %v2598_v39  ;;  %v4527_v28 = vld [vmem:[#allocation16_spill] sm:$0xff]  ;;  %v1369_v49 = vadd.f32 %v4536_v9, %v4535_v2  ;;  %v4537_v45 = vld [vmem:[#allocation21_spill] sm:$0xff] }
 0x315   : > { %v2602_v38 = vpop.eup %2601  ;;  %2613 = vtanh.f32 %v1402_v16  ;;  %1730 = vmatpush.msra.mxu1 %v3957_v25  ;;  %1854 = vmatpush.msra.mxu3 %v2600_v62  ;;  %v4538_v16 = vld [vmem:[#allocation9_spill] sm:$0xff] }
 0x316   : > { %v2604_v46 = vpop.eup %2603  ;;  %2615 = vtanh.f32 %v1467_v27  ;;  %1666 = vmatpush.msra.mxu0 %v3947_v26  ;;  %1790 = vmatpush.msra.mxu2 %v2602_v38  ;;  %v1390_v26 = vadd.f32 %v3800_v53, %v3818_v12  ;;  %v1384_v12 = vadd.f32 %v3776_v58, %v3838_v57  ;;  %v1434_v17 = vadd.f32 %v4538_v16, %v4535_v2  ;;  %v2197_v38 = vld [vmem:[%s4436_s3 + $0x108] sm:$0xff]  ;;  %v4156_v2 = vpop.permute.xlu0 %1646 }
 0x317   : > { %v2606_v14 = vpop.eup %2605  ;;  %2617 = vtanh.f32 %v1399_v10  ;;  %1731 = vmatpush.msra.mxu1 %v3951_v3  ;;  %1855 = vmatpush.msra.mxu3 %v2604_v46 }
 0x318   : > { %v2608_v29 = vpop.eup %2607  ;;  %2619 = vtanh.f32 %v1464_v0  ;;  %1667 = vmatpush.msra.mxu0 %v3940_v30  ;;  %1791 = vmatpush.msra.mxu2 %v2606_v14  ;;  %v4524_v30 = vld [vmem:[#allocation19_spill] sm:$0xff] }
 0x319   : > { %v2610_v48 = vpop.eup %2609  ;;  %2621 = vtanh.f32 %v1396_v50  ;;  %1732 = vmatpush.msra.mxu1 %v3943_v8  ;;  %1856 = vmatpush.msra.mxu3 %v2608_v29  ;;  %v1452_v8 = vadd.f32 %v3790_v42, %v3816_v59  ;;  %v1381_v59 = vadd.f32 %v3766_v21, %v3836_v5  ;;  %v2198_v29 = vld [vmem:[%s4436_s3 + $0x110] sm:$0xff] }
 0x31a   : > { %v2612_v19 = vpop.eup %2611  ;;  %2623 = vtanh.f32 %v1461_v31  ;;  %1668 = vmatpush.msra.mxu0 %v3932_v52  ;;  %1792 = vmatpush.msra.mxu2 %v2610_v48  ;;  %v1449_v52 = vadd.f32 %v3778_v32, %v3838_v57  ;;  %v4521_v57 = vld [vmem:[#allocation7_spill] sm:$0xff] }
 0x31b   : > { %v2614_v23 = vpop.eup %2613  ;;  %2625 = vtanh.f32 %v1393_v41  ;;  %1733 = vmatpush.msra.mxu1 %v3937_v63  ;;  %1857 = vmatpush.msra.mxu3 %v2612_v19  ;;  %v1446_v63 = vadd.f32 %v3768_v37, %v3836_v5  ;;  %v4525_v5 = vld [vmem:[#allocation11_spill] sm:$0xff]  ;;  %v2202_v19 = vld [vmem:[%s4436_s3 + $0x130] sm:$0xff] }
 0x31c   : > { %v2616_v53 = vpop.eup %2615  ;;  %2627 = vtanh.f32 %v1458_v51  ;;  %1669 = vmatpush.msra.mxu0 %v3928_v1  ;;  %1793 = vmatpush.msra.mxu2 %v2614_v23  ;;  %v4522_v1 = vld [vmem:[#allocation17_spill] sm:$0xff]  ;;  %v1440_v7 = vadd.f32 %v4528_v20, %v4525_v5  ;;  %v2199_v51 = vld [vmem:[%s4436_s3 + $0x118] sm:$0xff]  ;;  %v2200_v48 = vld [vmem:[%s4436_s3 + $0x120] sm:$0xff] }
 0x31d   : > { %v2618_v18 = vpop.eup %2617  ;;  %2629 = vtanh.f32 %v1390_v26  ;;  %1734 = vmatpush.msra.mxu1 %v3930_v36  ;;  %1858 = vmatpush.msra.mxu3 %v2616_v53  ;;  %v2201_v26 = vld [vmem:[%s4436_s3 + $0x128] sm:$0xff]  ;;  %v2204_v23 = vld [vmem:[%s4436_s3 + $0x140] sm:$0xff]  ;;  %v2206_v53 = vld [vmem:[%s4436_s3 + $0x150] sm:$0xff] }
 0x31e   : > { %v2620_v54 = vpop.eup %2619  ;;  %2631 = vtanh.f32 %v1455_v55  ;;  %1670 = vmatpush.msra.mxu0 %v3920_v34  ;;  %1794 = vmatpush.msra.mxu2 %v2618_v18  ;;  %v1378_v34 = vadd.f32 %v4521_v57, %v3830_v60  ;;  %v2203_v55 = vld [vmem:[%s4436_s3 + $0x138] sm:$0xff]  ;;  %v2208_v18 = vld [vmem:[%s4436_s3 + $0x160] sm:$0xff] }
 0x31f   : > { %v2622_v42 = vpop.eup %2621  ;;  %2633 = vtanh.f32 %v1387_v6  ;;  %1735 = vmatpush.msra.mxu1 %v3924_v35  ;;  %1859 = vmatpush.msra.mxu3 %v2620_v54  ;;  %v4523_v35 = vld [vmem:[#allocation23_spill] sm:$0xff]  ;;  %v2205_v6 = vld [vmem:[%s4436_s3 + $0x148] sm:$0xff]  ;;  %v2210_v54 = vld [vmem:[%s4436_s3 + $0x170] sm:$0xff] }
 0x320   : > { %v2624_v58 = vpop.eup %2623  ;;  %2635 = vtanh.f32 %v1452_v8  ;;  %1671 = vmatpush.msra.mxu0 %v3908_v11  ;;  %1795 = vmatpush.msra.mxu2 %v2622_v42  ;;  %v1443_v36 = vadd.f32 %v4523_v35, %v3830_v60  ;;  %v4526_v11 = vld [vmem:[#allocation22_spill] sm:$0xff] }
 0x321   : > { %v2626_v32 = vpop.eup %2625  ;;  %2637 = vtanh.f32 %v1384_v12  ;;  %1736 = vmatpush.msra.mxu1 %v4522_v1  ;;  %1860 = vmatpush.msra.mxu3 %v2624_v58  ;;  %v1375_v3 = vadd.f32 %v4526_v11, %v4525_v5  ;;  %v2207_v8 = vld [vmem:[%s4436_s3 + $0x158] sm:$0xff]  ;;  %v2209_v12 = vld [vmem:[%s4436_s3 + $0x168] sm:$0xff] }
 0x322   : > { %v2628_v21 = vpop.eup %2627  ;;  %2639 = vtanh.f32 %v1449_v52  ;;  %1672 = vmatpush.msra.mxu0 %v4524_v30  ;;  %1796 = vmatpush.msra.mxu2 %v2626_v32  ;;  %v2211_v52 = vld [vmem:[%s4436_s3 + $0x178] sm:$0xff] }
 0x323   : > { %v2630_v37 = vpop.eup %2629  ;;  %2641 = vtanh.f32 %v1381_v59  ;;  %1737 = vmatpush.msra.mxu1 %v4527_v28  ;;  %1861 = vmatpush.msra.mxu3 %v2628_v21 }
 0x324   : > { %v2632_v25 = vpop.eup %2631  ;;  %2643 = vtanh.f32 %v1446_v63  ;;  %1673 = vmatpush.msra.mxu0 %v4529_v15  ;;  %1797 = vmatpush.msra.mxu2 %v2630_v37 }
 0x325   : > { %v2634_v60 = vpop.eup %2633  ;;  %2645 = vtanh.f32 %v1378_v34  ;;  %1738 = vmatpush.msra.mxu1 %v4532_v40  ;;  %1862 = vmatpush.msra.mxu3 %v2632_v25 }
 0x326   : > { %v2636_v44 = vpop.eup %2635  ;;  %2647 = vtanh.f32 %v1443_v36  ;;  %1674 = vmatpush.msra.mxu0 %v4534_v22  ;;  %1798 = vmatpush.msra.mxu2 %v2634_v60 }
 0x327   : > { %v2638_v43 = vpop.eup %2637  ;;  %2649 = vtanh.f32 %v1375_v3  ;;  %1739 = vmatpush.msra.mxu1 %v4537_v45  ;;  %1863 = vmatpush.msra.mxu3 %v2636_v44  ;;  %v4162_v45 = vpop.permute.xlu2 %1651 }
 0x328   : > { %v2640_v33 = vpop.eup %2639  ;;  %2651 = vtanh.f32 %v1440_v7  ;;  %1675 = vmatmul.f32.vlgmr.msra.gmra.mxu0 %v2196_v13  ;;  %1740 = vmatmul.f32.vlgmr.msra.gmra.mxu1 %v2196_v13 }
 0x329   : > { %v2642_v27 = vpop.eup %2641  ;;  %2653 = vtanh.f32 %v1372_v56  ;;  %1799 = vmatpush.msra.mxu2 %v2638_v43  ;;  %1864 = vmatpush.msra.mxu3 %v2640_v33  ;;  %v4140_v56 = vpop.permute.xlu1 %1656 }
 0x32a   : > { %v2644_v39 = vpop.eup %2643  ;;  %2655 = vtanh.f32 %v1437_v47 }
 0x32b   : > { %v2646_v10 = vpop.eup %2645  ;;  %2657 = vtanh.f32 %v1369_v49  ;;  %1800 = vmatpush.msra.mxu2 %v2642_v27  ;;  %1865 = vmatpush.msra.mxu3 %v2644_v39 }
 0x32c   : > { %v2648_v62 = vpop.eup %2647  ;;  %2659 = vtanh.f32 %v1434_v17 }
 0x32d   : > { %v2650_v0 = vpop.eup %2649  ;;  %1801 = vmatpush.msra.mxu2 %v2646_v10  ;;  %1866 = vmatpush.msra.mxu3 %v2648_v62  ;;  %v4174_v10 = vpop.permute.xlu0 %1631 }
 0x32e   : > { %v2652_v50 = vpop.eup %2651 }
 0x32f   : > { %v2654_v46 = vpop.eup %2653  ;;  %1802 = vmatpush.msra.mxu2 %v2650_v0  ;;  %1867 = vmatpush.msra.mxu3 %v2652_v50  ;;  %v4176_v62 = vpop.permute.xlu2 %1636 }
 0x330   : > { %v2656_v31 = vpop.eup %2655  ;;  %1678 = vmatmul.f32.gmra.mxu0 %v2197_v38  ;;  %1743 = vmatmul.f32.gmra.mxu1 %v2197_v38 }
 0x331   : > { %v2658_v14 = vpop.eup %2657  ;;  %1803 = vmatpush.msra.mxu2 %v2654_v46  ;;  %1868 = vmatpush.msra.mxu3 %v2656_v31  ;;  %v4150_v47 = vpop.permute.xlu1 %1641 }
 0x332   : > { %v2660_v41 = vpop.eup %2659 }
 0x333   : > { %1804 = vmatpush.msra.mxu2 %v2658_v14  ;;  %1869 = vmatpush.msra.mxu3 %v2660_v41 }
 0x334   : > { %1805 = vmatmul.f32.vlgmr.msra.gmra.mxu2 %v2196_v13  ;;  %1870 = vmatmul.f32.vlgmr.msra.gmra.mxu3 %v2196_v13 }
 0x335   : > { %v4188_v14 = vpop.permute.xlu0 %1616 }
 0x337   : > { %v4190_v41 = vpop.permute.xlu2 %1621 }
 0x338   : > { %1681 = vmatmul.f32.gmra.mxu0 %v2198_v29  ;;  %1746 = vmatmul.f32.gmra.mxu1 %v2198_v29 }
 0x339   : > { %v4168_v17 = vpop.permute.xlu1 %1626 }
 0x33c   : > { %1808 = vmatmul.f32.gmra.mxu2 %v2197_v38  ;;  %1873 = vmatmul.f32.gmra.mxu3 %v2197_v38 }
 0x340   : > { %1684 = vmatmul.f32.gmra.mxu0 %v2199_v51  ;;  %1749 = vmatmul.f32.gmra.mxu1 %v2199_v51 }
 0x341   : > { %v4186_v31 = vpop.permute.xlu1 %1611 }
 0x344   : > { %1811 = vmatmul.f32.gmra.mxu2 %v2198_v29  ;;  %1876 = vmatmul.f32.gmra.mxu3 %v2198_v29 }
 0x348   : > { %1687 = vmatmul.f32.gmra.mxu0 %v2200_v48  ;;  %1752 = vmatmul.f32.gmra.mxu1 %v2200_v48 }
 0x34c   : > { %1814 = vmatmul.f32.gmra.mxu2 %v2199_v51  ;;  %1879 = vmatmul.f32.gmra.mxu3 %v2199_v51 }
 0x350   : > { %1690 = vmatmul.f32.gmra.mxu0 %v2201_v26  ;;  %1755 = vmatmul.f32.gmra.mxu1 %v2201_v26 }
 0x354   : > { %1817 = vmatmul.f32.gmra.mxu2 %v2200_v48  ;;  %1882 = vmatmul.f32.gmra.mxu3 %v2200_v48 }
 0x358   : > { %1693 = vmatmul.f32.gmra.mxu0 %v2202_v19  ;;  %1758 = vmatmul.f32.gmra.mxu1 %v2202_v19 }
 0x35c   : > { %1820 = vmatmul.f32.gmra.mxu2 %v2201_v26  ;;  %1885 = vmatmul.f32.gmra.mxu3 %v2201_v26 }
 0x360   : > { %1696 = vmatmul.f32.gmra.mxu0 %v2203_v55  ;;  %1761 = vmatmul.f32.gmra.mxu1 %v2203_v55 }
 0x364   : > { %1823 = vmatmul.f32.gmra.mxu2 %v2202_v19  ;;  %1888 = vmatmul.f32.gmra.mxu3 %v2202_v19  ;;  %v4200_v19 = vpop.permute.xlu1 %1596 }
 0x365   : > { %4549 = vst [vmem:[#allocation6_spill] sm:$0xff] %v4200_v19 }
 0x368   : > { %1699 = vmatmul.f32.gmra.mxu0 %v2204_v23  ;;  %1764 = vmatmul.f32.gmra.mxu1 %v2204_v23 }
 0x36c   : > { %1826 = vmatmul.f32.gmra.mxu2 %v2203_v55  ;;  %1891 = vmatmul.f32.gmra.mxu3 %v2203_v55  ;;  %v4202_v55 = vpop.permute.xlu0 %1601 }
 0x370   : > { %1702 = vmatmul.f32.gmra.mxu0 %v2205_v6  ;;  %1767 = vmatmul.f32.gmra.mxu1 %v2205_v6 }
 0x374   : > { %1829 = vmatmul.f32.gmra.mxu2 %v2204_v23  ;;  %1894 = vmatmul.f32.gmra.mxu3 %v2204_v23 }
 0x378   : > { %1705 = vmatmul.f32.gmra.mxu0 %v2206_v53  ;;  %1770 = vmatmul.f32.gmra.mxu1 %v2206_v53 }
 0x37c   : > { %1832 = vmatmul.f32.gmra.mxu2 %v2205_v6  ;;  %1897 = vmatmul.f32.gmra.mxu3 %v2205_v6 }
 0x380   : > { %1708 = vmatmul.f32.gmra.mxu0 %v2207_v8  ;;  %1773 = vmatmul.f32.gmra.mxu1 %v2207_v8 }
 0x384   : > { %1835 = vmatmul.f32.gmra.mxu2 %v2206_v53  ;;  %1900 = vmatmul.f32.gmra.mxu3 %v2206_v53  ;;  %v4208_v53 = vpop.permute.xlu2 %1606 }
 0x388   : > { %1711 = vmatmul.f32.gmra.mxu0 %v2208_v18  ;;  %1776 = vmatmul.f32.gmra.mxu1 %v2208_v18 }
 0x38c   : > { %1838 = vmatmul.f32.gmra.mxu2 %v2207_v8  ;;  %1903 = vmatmul.f32.gmra.mxu3 %v2207_v8 }
 0x390   : > { %1714 = vmatmul.f32.gmra.mxu0 %v2209_v12  ;;  %1779 = vmatmul.f32.gmra.mxu1 %v2209_v12 }
 0x394   : > { %1841 = vmatmul.f32.gmra.mxu2 %v2208_v18  ;;  %1906 = vmatmul.f32.gmra.mxu3 %v2208_v18 }
 0x398   : > { %1717 = vmatmul.f32.gmra.mxu0 %v2210_v54  ;;  %1782 = vmatmul.f32.gmra.mxu1 %v2210_v54 }
 0x39c   : > { %1844 = vmatmul.f32.gmra.mxu2 %v2209_v12  ;;  %1909 = vmatmul.f32.gmra.mxu3 %v2209_v12  ;;  %v4214_v12 = vpop.permute.xlu1 %1581 }
 0x39d   : > { %4550 = vst [vmem:[#allocation20_spill] sm:$0xff] %v4214_v12 }
 0x3a0   : > { %1720 = vmatmul.f32.gmra.mxu0 %v2211_v52  ;;  %1785 = vmatmul.f32.gmra.mxu1 %v2211_v52 }
 0x3a4   : > { %1847 = vmatmul.f32.gmra.mxu2 %v2210_v54  ;;  %1912 = vmatmul.f32.gmra.mxu3 %v2210_v54 }
 0x3a5   : > { %v4092_v42 = vpop.f32.mrf.mxu0  ;;  %v4094_v59 = vpop.f32.mrf.mxu1 }
 0x3ac   : > { %1850 = vmatmul.f32.gmra.mxu2 %v2211_v52  ;;  %1915 = vmatmul.f32.gmra.mxu3 %v2211_v52 }
 0x3ad   : > { %v4096_v58 = vpop.f32.mrf.mxu0  ;;  %v4098_v63 = vpop.f32.mrf.mxu1 }
 0x3b5   : > { %v4100_v32 = vpop.f32.mrf.mxu0  ;;  %v4102_v57 = vpop.f32.mrf.mxu1 }
 0x3b7   : > { %v4104_v34 = vpop.f32.mrf.mxu2  ;;  %v4106_v1 = vpop.f32.mrf.mxu3 }
 0x3b8   : > { %4539 = vst [vmem:[#allocation14_spill] sm:$0xff] %v4104_v34  ;;  %v1677_v34 = vadd.f32 %v4092_v42, %v4214_v12 }
 0x3b9   : > { %4540 = vst [vmem:[#allocation15_spill] sm:$0xff] %v4106_v1  ;;  %v4216_v1 = vpop.permute.xlu0 %1586 }
 0x3ba   : > { %4551 = vst [vmem:[#allocation24_spill] sm:$0xff] %v4216_v1  ;;  %2661 = vtanh.f32 %v1677_v34 }
 0x3bd   : > { %v4108_v21 = vpop.f32.mrf.mxu0  ;;  %v4110_v35 = vpop.f32.mrf.mxu1 }
 0x3bf   : > { %v4112_v36 = vpop.f32.mrf.mxu2  ;;  %v4114_v30 = vpop.f32.mrf.mxu3 }
 0x3c0   : > { %4541 = vst [vmem:[#allocation7_spill] sm:$0xff] %v4112_v36 }
 0x3c1   : > { %4542 = vst [vmem:[#allocation17_spill] sm:$0xff] %v4114_v30  ;;  %v1742_v30 = vadd.f32 %v4094_v59, %v4214_v12  ;;  %v1686_v59 = vadd.f32 %v4108_v21, %v4200_v19 }
 0x3c3   : > { %2663 = vtanh.f32 %v1742_v30  ;;  %v4248_v30 = vpop.eup %2661 }
 0x3c4   : > { %4553 = vst [vmem:[#allocation10_spill] sm:$0xff] %v4248_v30 }
 0x3c5   : > { %v4116_v37 = vpop.f32.mrf.mxu0  ;;  %v4118_v5 = vpop.f32.mrf.mxu1 }
 0x3c7   : > { %v4120_v11 = vpop.f32.mrf.mxu2  ;;  %v4122_v3 = vpop.f32.mrf.mxu3 }
 0x3c8   : > { %4543 = vst [vmem:[#allocation23_spill] sm:$0xff] %v4120_v11  ;;  %v1680_v11 = vadd.f32 %v4096_v58, %v4216_v1  ;;  %v1751_v58 = vadd.f32 %v4110_v35, %v4200_v19 }
 0x3c9   : > { %4544 = vst [vmem:[#allocation19_spill] sm:$0xff] %v4122_v3  ;;  %v4252_v35 = vpop.eup %2663 }
 0x3ca   : > { %2665 = vtanh.f32 %v1680_v11  ;;  %4554 = vst [vmem:[#allocation5_spill] sm:$0xff] %v4252_v35 }
 0x3cd   : > { %v4124_v28 = vpop.f32.mrf.mxu0  ;;  %v4126_v25 = vpop.f32.mrf.mxu1 }
 0x3ce   : > { %v1692_v21 = vadd.f32 %v4124_v28, %v4208_v53 }
 0x3cf   : > { %v4128_v20 = vpop.f32.mrf.mxu2  ;;  %v4130_v7 = vpop.f32.mrf.mxu3 }
 0x3d0   : > { %4545 = vst [vmem:[#allocation11_spill] sm:$0xff] %v4128_v20  ;;  %v1745_v20 = vadd.f32 %v4098_v63, %v4216_v1  ;;  %v1689_v63 = vadd.f32 %v4116_v37, %v4202_v55  ;;  %v1757_v37 = vadd.f32 %v4126_v25, %v4208_v53  ;;  %v4256_v11 = vpop.eup %2665 }
 0x3d1   : > { %4546 = vst [vmem:[#allocation22_spill] sm:$0xff] %v4130_v7  ;;  %v4228_v7 = vpop.permute.xlu2 %1591 }
 0x3d2   : > { %4552 = vst [vmem:[#allocation18_spill] sm:$0xff] %v4228_v7  ;;  %v1748_v42 = vadd.f32 %v4102_v57, %v4228_v7  ;;  %2667 = vtanh.f32 %v1745_v20 }
 0x3d5   : > { %v4132_v15 = vpop.f32.mrf.mxu0  ;;  %v4134_v60 = vpop.f32.mrf.mxu1 }
 0x3d7   : > { %v4136_v61 = vpop.f32.mrf.mxu2  ;;  %v4138_v4 = vpop.f32.mrf.mxu3 }
 0x3d8   : > { %4547 = vst [vmem:[#allocation16_spill] sm:$0xff] %v4136_v61  ;;  %v4260_v20 = vpop.eup %2667 }
 0x3d9   : > { %4548 = vst [vmem:[#allocation12_spill] sm:$0xff] %v4138_v4  ;;  %v1683_v4 = vadd.f32 %v4100_v32, %v4228_v7  ;;  %v1754_v32 = vadd.f32 %v4118_v5, %v4202_v55  ;;  %v1695_v5 = vadd.f32 %v4132_v15, %v4186_v31 }
 0x3db   : > { %2669 = vtanh.f32 %v1683_v4  ;;  %v1760_v4 = vadd.f32 %v4134_v60, %v4186_v31 }
 0x3dc   : > { %2671 = vtanh.f32 %v1748_v42 }
 0x3dd   : > { %v4142_v40 = vpop.f32.mrf.mxu0  ;;  %v4144_v13 = vpop.f32.mrf.mxu1  ;;  %2673 = vtanh.f32 %v1686_v59 }
 0x3de   : > { %2675 = vtanh.f32 %v1751_v58 }
 0x3df   : > { %v4146_v44 = vpop.f32.mrf.mxu2  ;;  %v4148_v24 = vpop.f32.mrf.mxu3  ;;  %2677 = vtanh.f32 %v1689_v63 }
 0x3e0   : > { %2679 = vtanh.f32 %v1754_v32 }
 0x3e1   : > { %v4264_v42 = vpop.eup %2669  ;;  %2681 = vtanh.f32 %v1692_v21 }
 0x3e2   : > { %v4266_v28 = vpop.eup %2671  ;;  %2683 = vtanh.f32 %v1757_v37 }
 0x3e3   : > { %v4268_v58 = vpop.eup %2673  ;;  %2685 = vtanh.f32 %v1695_v5 }
 0x3e4   : > { %v4273_v1 = vpop.eup %2675  ;;  %2687 = vtanh.f32 %v1760_v4 }
 0x3e5   : > { %v4152_v22 = vpop.f32.mrf.mxu0  ;;  %v4154_v43 = vpop.f32.mrf.mxu1 }
 0x3e6   : > { %v4280_v37 = vpop.eup %2677 }
 0x3e7   : > { %v4158_v9 = vpop.f32.mrf.mxu2  ;;  %v4160_v49 = vpop.f32.mrf.mxu3 }
 0x3e8   : > { %v4283_v5 = vpop.eup %2679 }
 0x3ed   : > { %v4164_v33 = vpop.f32.mrf.mxu0  ;;  %v4166_v16 = vpop.f32.mrf.mxu1 }
 0x3ef   : > { %v4170_v27 = vpop.f32.mrf.mxu2  ;;  %v4172_v39 = vpop.f32.mrf.mxu3 }
 0x3f5   : > { %v4178_v0 = vpop.f32.mrf.mxu0  ;;  %v4180_v38 = vpop.f32.mrf.mxu1 }
 0x3f7   : > { %v4182_v50 = vpop.f32.mrf.mxu2  ;;  %v4184_v46 = vpop.f32.mrf.mxu3 }
 0x3fd   : > { %v4192_v29 = vpop.f32.mrf.mxu0  ;;  %v4194_v51 = vpop.f32.mrf.mxu1 }
 0x3ff   : > { %v4196_v48 = vpop.f32.mrf.mxu2  ;;  %v4198_v26 = vpop.f32.mrf.mxu3 }
 0x405   : > { %v4204_v23 = vpop.f32.mrf.mxu0  ;;  %v4206_v6 = vpop.f32.mrf.mxu1 }
 0x406   : > { %v1713_v4 = vadd.f32 %v4204_v23, %v4150_v47 }
 0x407   : > { %v4210_v8 = vpop.f32.mrf.mxu2  ;;  %v4212_v18 = vpop.f32.mrf.mxu3 }
 0x40d   : > { %v1715_v54 = vpop.f32.mrf.mxu0  ;;  %v1780_v52 = vpop.f32.mrf.mxu1 }
 0x40e   : > { %v1716_v35 = vadd.f32 %v1715_v54, %v4156_v2  ;;  %v1710_v54 = vadd.f32 %v4192_v29, %v4176_v62 }
 0x40f   : > { %v4222_v36 = vpop.f32.mrf.mxu2  ;;  %v4224_v3 = vpop.f32.mrf.mxu3 }
 0x415   : > { %v1718_v12 = vpop.f32.mrf.mxu0  ;;  %v1783_v61 = vpop.f32.mrf.mxu1 }
 0x416   : > { %v1719_v63 = vadd.f32 %v1718_v12, %v4162_v45  ;;  %v1784_v60 = vadd.f32 %v1783_v61, %v4162_v45  ;;  %v1781_v12 = vadd.f32 %v1780_v52, %v4156_v2 }
 0x417   : > { %v4244_v34 = vpop.f32.mrf.mxu2  ;;  %v4246_v57 = vpop.f32.mrf.mxu3 }
 0x41d   : > { %v1721_v59 = vpop.f32.mrf.mxu0  ;;  %v1786_v25 = vpop.f32.mrf.mxu1 }
 0x41e   : > { %v1722_v15 = vadd.f32 %v1721_v59, %v4140_v56  ;;  %v1787_v32 = vadd.f32 %v1786_v25, %v4140_v56  ;;  %v4286_v59 = vpop.eup %2681  ;;  %v1778_v25 = vadd.f32 %v4206_v6, %v4150_v47  ;;  %v1772_v6 = vadd.f32 %v4180_v38, %v4174_v10 }
 0x41f   : > { %v4276_v21 = vpop.f32.mrf.mxu2  ;;  %v4278_v7 = vpop.f32.mrf.mxu3  ;;  %v1701_v38 = vadd.f32 %v4152_v22, %v4190_v41 }
 0x420   : > { %2689 = vtanh.f32 %v1722_v15  ;;  %v4290_v61 = vpop.eup %2683  ;;  %v1775_v15 = vadd.f32 %v4194_v51, %v4176_v62 }
 0x421   : > { %2691 = vtanh.f32 %v1787_v32  ;;  %v4294_v19 = vpop.eup %2685 }
 0x422   : > { %2693 = vtanh.f32 %v1719_v63  ;;  %v4298_v52 = vpop.eup %2687  ;;  %v1707_v63 = vadd.f32 %v4178_v0, %v4174_v10 }
 0x423   : > { %2695 = vtanh.f32 %v1784_v60 }
 0x424   : > { %2697 = vtanh.f32 %v1716_v35  ;;  %v1704_v35 = vadd.f32 %v4164_v33, %v4168_v17 }
 0x425   : > { %2699 = vtanh.f32 %v1781_v12  ;;  %v1769_v12 = vadd.f32 %v4166_v16, %v4168_v17 }
 0x426   : > { %v2690_v23 = vpop.eup %2689  ;;  %2701 = vtanh.f32 %v1713_v4 }
 0x427   : > { %v2692_v32 = vpop.eup %2691  ;;  %2703 = vtanh.f32 %v1778_v25  ;;  %v1848_v60 = vpop.f32.mrf.mxu2  ;;  %1990 = vmatpush.msrb.mxu0 %v2690_v23  ;;  %v1766_v25 = vadd.f32 %v4154_v43, %v4190_v41 }
 0x428   : > { %v1913_v30 = vpop.f32.mrf.mxu3  ;;  %v2694_v29 = vpop.eup %2693  ;;  %2705 = vtanh.f32 %v1710_v54  ;;  %2010 = vmatpush.msrb.mxu1 %v2692_v32  ;;  %v1698_v54 = vadd.f32 %v4142_v40, %v4188_v14  ;;  %v1849_v40 = vadd.f32 %v1848_v60, %v4162_v45  ;;  %v1911_v60 = vadd.f32 %v4278_v7, %v4156_v2 }
 0x429   : > { %v2696_v51 = vpop.eup %2695  ;;  %2707 = vtanh.f32 %v1775_v15  ;;  %1991 = vmatpush.msrb.mxu0 %v2694_v29  ;;  %v1763_v15 = vadd.f32 %v4144_v13, %v4188_v14 }
 0x42a   : > { %v2698_v0 = vpop.eup %2697  ;;  %2709 = vtanh.f32 %v1707_v63  ;;  %2011 = vmatpush.msrb.mxu1 %v2696_v51 }
 0x42b   : > { %v2700_v4 = vpop.eup %2699  ;;  %2711 = vtanh.f32 %v1772_v6  ;;  %1992 = vmatpush.msrb.mxu0 %v2698_v0 }
 0x42c   : > { %v2702_v33 = vpop.eup %2701  ;;  %2713 = vtanh.f32 %v1704_v35  ;;  %2012 = vmatpush.msrb.mxu1 %v2700_v4  ;;  %v1914_v35 = vadd.f32 %v1913_v30, %v4162_v45  ;;  %v1908_v30 = vadd.f32 %v4246_v57, %v4150_v47  ;;  %v1840_v4 = vadd.f32 %v4222_v36, %v4176_v62 }
 0x42d   : > { %v2704_v16 = vpop.eup %2703  ;;  %2715 = vtanh.f32 %v1769_v12  ;;  %1993 = vmatpush.msrb.mxu0 %v2702_v33  ;;  %v1846_v12 = vadd.f32 %v4276_v21, %v4156_v2  ;;  %v1905_v2 = vadd.f32 %v4224_v3, %v4176_v62  ;;  %v1902_v57 = vadd.f32 %v4212_v18, %v4174_v10 }
 0x42e   : > { %v2706_v22 = vpop.eup %2705  ;;  %2717 = vtanh.f32 %v1701_v38  ;;  %2013 = vmatpush.msrb.mxu1 %v2704_v16  ;;  %v1834_v3 = vadd.f32 %v4196_v48, %v4168_v17  ;;  %v1896_v18 = vadd.f32 %v4184_v46, %v4190_v41 }
 0x42f   : > { %v2708_v23 = vpop.eup %2707  ;;  %2719 = vtanh.f32 %v1766_v25  ;;  %v1851_v43 = vpop.f32.mrf.mxu2  ;;  %1994 = vmatpush.msrb.mxu0 %v2706_v22  ;;  %v1837_v25 = vadd.f32 %v4210_v8, %v4174_v10  ;;  %v1899_v8 = vadd.f32 %v4198_v26, %v4168_v17  ;;  %v1828_v26 = vadd.f32 %v4170_v27, %v4188_v14  ;;  %v4563_v22 = vld [vmem:[#allocation23_spill] sm:$0xff] }
 0x430   : > { %v1916_v63 = vpop.f32.mrf.mxu3  ;;  %v2710_v32 = vpop.eup %2709  ;;  %2721 = vtanh.f32 %v1698_v54  ;;  %v1852_v6 = vadd.f32 %v1851_v43, %v4140_v56  ;;  %2014 = vmatpush.msrb.mxu1 %v2708_v23  ;;  %v4561_v54 = vld [vmem:[#allocation22_spill] sm:$0xff] }
 0x431   : > { %v1917_v29 = vadd.f32 %v1916_v63, %v4140_v56  ;;  %v2712_v13 = vpop.eup %2711  ;;  %2723 = vtanh.f32 %v1763_v15  ;;  %1995 = vmatpush.msrb.mxu0 %v2710_v32  ;;  %v1843_v56 = vadd.f32 %v4244_v34, %v4150_v47  ;;  %v4562_v15 = vld [vmem:[#allocation18_spill] sm:$0xff]  ;;  %v4564_v63 = vld [vmem:[#allocation19_spill] sm:$0xff] }
 0x432   : > { %v2714_v51 = vpop.eup %2713  ;;  %2725 = vtanh.f32 %v1852_v6  ;;  %2015 = vmatpush.msrb.mxu1 %v2712_v13  ;;  %v1813_v23 = vadd.f32 %v4563_v22, %v4562_v15  ;;  %v1878_v32 = vadd.f32 %v4564_v63, %v4562_v15  ;;  %v4565_v6 = vld [vmem:[#allocation24_spill] sm:$0xff] }
 0x433   : > { %v2716_v0 = vpop.eup %2715  ;;  %2727 = vtanh.f32 %v1917_v29  ;;  %1996 = vmatpush.msrb.mxu0 %v2714_v51  ;;  %v4566_v29 = vld [vmem:[#allocation7_spill] sm:$0xff]  ;;  %v4567_v51 = vld [vmem:[#allocation17_spill] sm:$0xff] }
 0x434   : > { %v2718_v38 = vpop.eup %2717  ;;  %2729 = vtanh.f32 %v1849_v40  ;;  %2016 = vmatpush.msrb.mxu1 %v2716_v0  ;;  %v1810_v13 = vadd.f32 %v4566_v29, %v4565_v6 }
 0x435   : > { %v2720_v45 = vpop.eup %2719  ;;  %2731 = vtanh.f32 %v1914_v35  ;;  %1997 = vmatpush.msrb.mxu0 %v2718_v38  ;;  %v4569_v38 = vld [vmem:[#allocation14_spill] sm:$0xff] }
 0x436   : > { %v2722_v21 = vpop.eup %2721  ;;  %2733 = vtanh.f32 %v1846_v12  ;;  %2017 = vmatpush.msrb.mxu1 %v2720_v45  ;;  %v1875_v12 = vadd.f32 %v4567_v51, %v4565_v6 }
 0x437   : > { %v2724_v7 = vpop.eup %2723  ;;  %2735 = vtanh.f32 %v1911_v60  ;;  %1998 = vmatpush.msrb.mxu0 %v2722_v21  ;;  %v4568_v60 = vld [vmem:[#allocation20_spill] sm:$0xff] }
 0x438   : > { %v2726_v34 = vpop.eup %2725  ;;  %2737 = vtanh.f32 %v1843_v56  ;;  %2018 = vmatpush.msrb.mxu1 %v2724_v7  ;;  %v1807_v56 = vadd.f32 %v4569_v38, %v4568_v60 }
 0x439   : > { %v2728_v47 = vpop.eup %2727  ;;  %2739 = vtanh.f32 %v1908_v30  ;;  %1999 = vmatpush.msrb.mxu0 %v4294_v19  ;;  %2030 = vmatpush.msrb.mxu2 %v2726_v34  ;;  %v1831_v19 = vadd.f32 %v4182_v50, %v4190_v41  ;;  %v1825_v41 = vadd.f32 %v4158_v9, %v4186_v31  ;;  %v4570_v30 = vld [vmem:[#allocation15_spill] sm:$0xff] }
 0x43a   : > { %v2730_v36 = vpop.eup %2729  ;;  %2741 = vtanh.f32 %v1840_v4  ;;  %2019 = vmatpush.msrb.mxu1 %v4298_v52  ;;  %2050 = vmatpush.msrb.mxu3 %v2728_v47  ;;  %v1872_v21 = vadd.f32 %v4570_v30, %v4568_v60 }
 0x43b   : > { %v2732_v62 = vpop.eup %2731  ;;  %2743 = vtanh.f32 %v1905_v2  ;;  %2000 = vmatpush.msrb.mxu0 %v4286_v59  ;;  %2031 = vmatpush.msrb.mxu2 %v2730_v36  ;;  %v1893_v59 = vadd.f32 %v4172_v39, %v4188_v14  ;;  %v1822_v14 = vadd.f32 %v4146_v44, %v4208_v53  ;;  %v4375_v44 = vld [vmem:[%s4438_s5] sm:$0x3] }
 0x43c   : > { %v2734_v10 = vpop.eup %2733  ;;  %2745 = vtanh.f32 %v1837_v25  ;;  %2020 = vmatpush.msrb.mxu1 %v4290_v61  ;;  %2051 = vmatpush.msrb.mxu3 %v2732_v62  ;;  %v4559_v61 = vld [vmem:[#allocation11_spill] sm:$0xff] }
 0x43d   : > { %v2736_v48 = vpop.eup %2735  ;;  %2747 = vtanh.f32 %v1902_v57  ;;  %2001 = vmatpush.msrb.mxu0 %v4280_v37  ;;  %2032 = vmatpush.msrb.mxu2 %v2734_v10  ;;  %v1890_v37 = vadd.f32 %v4160_v49, %v4186_v31  ;;  %v4555_v31 = vld [vmem:[#allocation16_spill] sm:$0xff]  ;;  %v1988_v10 = vpop.permute.xlu2 %1987 }
 0x43e   : > { %v2738_v17 = vpop.eup %2737  ;;  %2749 = vtanh.f32 %v1834_v3  ;;  %2021 = vmatpush.msrb.mxu1 %v4283_v5  ;;  %2052 = vmatpush.msrb.mxu3 %v2736_v48  ;;  %v4558_v5 = vld [vmem:[#allocation6_spill] sm:$0xff] }
 0x43f   : > { %v2740_v50 = vpop.eup %2739  ;;  %2751 = vtanh.f32 %v1899_v8  ;;  %2002 = vmatpush.msrb.mxu0 %v4268_v58  ;;  %2033 = vmatpush.msrb.mxu2 %v2738_v17  ;;  %v1816_v52 = vadd.f32 %v4559_v61, %v4558_v5  ;;  %v1881_v16 = vadd.f32 %v4561_v54, %v4558_v5 }
 0x440   : > { %v2742_v46 = vpop.eup %2741  ;;  %2753 = vtanh.f32 %v1831_v19  ;;  %2022 = vmatpush.msrb.mxu1 %v4273_v1  ;;  %2053 = vmatpush.msrb.mxu3 %v2740_v50  ;;  %v1887_v1 = vadd.f32 %v4148_v24, %v4208_v53  ;;  %v4556_v24 = vld [vmem:[#allocation12_spill] sm:$0xff] }
 0x441   : > { %v2744_v27 = vpop.eup %2743  ;;  %2755 = vtanh.f32 %v1896_v18  ;;  %2003 = vmatpush.msrb.mxu0 %v4264_v42  ;;  %2034 = vmatpush.msrb.mxu2 %v2742_v46  ;;  %v1819_v42 = vadd.f32 %v4555_v31, %v4202_v55  ;;  %v1884_v53 = vadd.f32 %v4556_v24, %v4202_v55 }
 0x442   : > { %v2746_v39 = vpop.eup %2745  ;;  %2757 = vtanh.f32 %v1828_v26  ;;  %2023 = vmatpush.msrb.mxu1 %v4266_v28  ;;  %2054 = vmatpush.msrb.mxu3 %v2744_v27 }
 0x443   : > { %v2748_v9 = vpop.eup %2747  ;;  %2759 = vtanh.f32 %v1893_v59  ;;  %2004 = vmatpush.msrb.mxu0 %v4256_v11  ;;  %2035 = vmatpush.msrb.mxu2 %v2746_v39  ;;  %v4557_v11 = vld [vmem:[#allocation10_spill] sm:$0xff] }
 0x444   : > { %v2750_v49 = vpop.eup %2749  ;;  %2761 = vtanh.f32 %v1825_v41  ;;  %2024 = vmatpush.msrb.mxu1 %v4260_v20  ;;  %2055 = vmatpush.msrb.mxu3 %v2748_v9  ;;  %v4560_v20 = vld [vmem:[#allocation5_spill] sm:$0xff] }
 0x445   : > { %v2752_v28 = vpop.eup %2751  ;;  %2763 = vtanh.f32 %v1890_v37  ;;  %2005 = vmatpush.msrb.mxu0 %v4557_v11  ;;  %2036 = vmatpush.msrb.mxu2 %v2750_v49 }
 0x446   : > { %v2754_v58 = vpop.eup %2753  ;;  %2765 = vtanh.f32 %v1822_v14  ;;  %2025 = vmatpush.msrb.mxu1 %v4560_v20  ;;  %2056 = vmatpush.msrb.mxu3 %v2752_v28 }
 0x447   : > { %v2756_v33 = vpop.eup %2755  ;;  %2767 = vtanh.f32 %v1887_v1  ;;  %2006 = vmatmul.f32.vlgmr.msrb.gmra.mxu0 %v4375_v44  ;;  %2026 = vmatmul.f32.vlgmr.msrb.gmra.mxu1 %v4375_v44 }
 0x448   : > { %v2758_v55 = vpop.eup %2757  ;;  %2769 = vtanh.f32 %v1819_v42  ;;  %2037 = vmatpush.msrb.mxu2 %v2754_v58  ;;  %2057 = vmatpush.msrb.mxu3 %v2756_v33 }
 0x449   : > { %v2760_v43 = vpop.eup %2759  ;;  %2771 = vtanh.f32 %v1884_v53 }
 0x44a   : > { %v2762_v40 = vpop.eup %2761  ;;  %2773 = vtanh.f32 %v1816_v52  ;;  %2038 = vmatpush.msrb.mxu2 %v2758_v55  ;;  %2058 = vmatpush.msrb.mxu3 %v2760_v43 }
 0x44b   : > { %v2764_v35 = vpop.eup %2763  ;;  %2775 = vtanh.f32 %v1881_v16 }
 0x44c   : > { %v2766_v0 = vpop.eup %2765  ;;  %2777 = vtanh.f32 %v1813_v23  ;;  %2039 = vmatpush.msrb.mxu2 %v2762_v40  ;;  %2059 = vmatpush.msrb.mxu3 %v2764_v35 }
 0x44d   : > { %v2768_v45 = vpop.eup %2767  ;;  %2779 = vtanh.f32 %v1878_v32 }
 0x44e   : > { %v2770_v4 = vpop.eup %2769  ;;  %2781 = vtanh.f32 %v1810_v13  ;;  %2040 = vmatpush.msrb.mxu2 %v2766_v0  ;;  %2060 = vmatpush.msrb.mxu3 %v2768_v45 }
 0x44f   : > { %v2772_v7 = vpop.eup %2771  ;;  %2783 = vtanh.f32 %v1875_v12 }
 0x450   : > { %v2774_v2 = vpop.eup %2773  ;;  %2785 = vtanh.f32 %v1807_v56  ;;  %2041 = vmatpush.msrb.mxu2 %v2770_v4  ;;  %2061 = vmatpush.msrb.mxu3 %v2772_v7 }
 0x451   : > { %v2776_v34 = vpop.eup %2775  ;;  %2787 = vtanh.f32 %v1872_v21 }
 0x452   : > { %v2778_v25 = vpop.eup %2777  ;;  %2042 = vmatpush.msrb.mxu2 %v2774_v2  ;;  %2062 = vmatpush.msrb.mxu3 %v2776_v34 }
 0x453   : > { %v2780_v47 = vpop.eup %2779 }
 0x454   : > { %v2782_v57 = vpop.eup %2781  ;;  %2043 = vmatpush.msrb.mxu2 %v2778_v25  ;;  %2063 = vmatpush.msrb.mxu3 %v2780_v47 }
 0x455   : > { %v2784_v36 = vpop.eup %2783 }
 0x456   : > { %v2786_v3 = vpop.eup %2785  ;;  %2044 = vmatpush.msrb.mxu2 %v2782_v57  ;;  %2064 = vmatpush.msrb.mxu3 %v2784_v36 }
 0x457   : > { %v2788_v62 = vpop.eup %2787 }
 0x458   : > { %2045 = vmatpush.msrb.mxu2 %v2786_v3  ;;  %2065 = vmatpush.msrb.mxu3 %v2788_v62 }
 0x459   : > { %2046 = vmatmul.f32.vlgmr.msrb.gmra.mxu2 %v4375_v44  ;;  %2066 = vmatmul.f32.vlgmr.msrb.gmra.mxu3 %v4375_v44 }
 0x4c4   : > { %v2027_v8 = vpop.f32.mrf.mxu1  ;;  %v2007_v48 = vpop.f32.mrf.mxu0 }
 0x4c5   : > { %v2028_v19 = vadd.f32 %v2027_v8, %v1988_v10  ;;  %v2008_v46 = vadd.f32 %v2007_v48, %v1988_v10 }
 0x4c7   : > { %v2074_v26 = vrot.slane %v2028_v19, 6 }
 0x4c9   : > { %v2078_v37 = vsel %vm2077_vm0, %v2008_v46, %v2074_v26 }
 0x4dc   : > { %v2047_v18 = vpop.f32.mrf.mxu2  ;;  %v2067_v17 = vpop.f32.mrf.mxu3 }
 0x4dd   : > { %v2048_v50 = vadd.f32 %v2047_v18, %v1988_v10  ;;  %v2068_v59 = vadd.f32 %v2067_v17, %v1988_v10 }
 0x4df   : > { %v2075_v41 = vrot.slane %v2048_v50, 4  ;;  %v2076_v27 = vrot.slane %v2068_v59, 2 }
 0x4e1   : > { %v2080_v39 = vsel %vm2079_vm1, %v2075_v41, %v2076_v27 }
 0x4e2   : > { %v2082_v14 = vsel %vm2081_vm2, %v2078_v37, %v2080_v39 }
 0x4e3   : > { %2084 = vst [vmem:[%s270_s17] sm:$0xff] %v2082_v14 }
 0x4e4   : > { %2816 = shalt.err (!%p2813_p3)
}
 0x4e5   : > { %2234 = dma.vmem_to_hbm [thread:$0]  (%p2932_p5), %s2100_s18, 128, %s2102_s19, %s2086_s28  }
 0x4e6 PF: > { %p2240_p4 = scmp.ge.s32.totalorder %s2851_s27, 2  ;;  %s2113_s8 = sand.u32 1, %s2839_s24  }
 0x4e7   : > { %s2114_s14 = scalar_lea.sflag [#allocation3], %s2113_s8 }
 0x4e8   : > { %p2237_p7 = pnand %p2240_p4, %p2936_p6 }
 0x4ea   : > { %p2238_p8 = pneg %p2237_p7 }
 0x4ec   : > { %2834 = dma.done.wait (%p2238_p8), %s2114_s14, 128  }
 0x4ed   : > { %2836 = vsyncadd (%p2238_p8), %s2114_s14, 4294967168  ;;  %p17_p9 = scmp.ge.s32.totalorder %s2919_s30, 4   ;;  %s4571_s24 = smov %s2843_s25 }
 0x4ee   : > { %s4572_s25 = smov %s2847_s26  ;;  %s4573_s26 = smov %s2930_s10 }
 0x4ef   : > { %s4574_s27 = smov %s2919_s30  ;;  %19 = sbr.rel (!%p17_p9) target bundleno = 3 (0x3), region = 87 }
 0x4f4   :  { %2120 = vsyncpa [#allocation3], 1 }
 0x4f5   :  { %2122 = vsyncpa [#allocation3 + $0x1], 1 }

</bundles_post_ra>
